<compile_context>
chip_gen: v7x
topology: tpu7x:2x2x1
jax: 0.10.0
libtpu: 0.0.40
codegen_flags: <defaults>
</compile_context>

<pallas_src>
import functools

import jax
import jax.numpy as jnp
from jax.experimental import pallas as pl
from jax.experimental.pallas import tpu as pltpu

LANE = 128     # TPU lane width (last-dim tiling)
SUBLANE = 8    # TPU sublane width (second-to-last-dim tiling)


def _round_up(x, m):
    return ((x + m - 1) // m) * m


def _vmem_limit_bytes(est):
    # Generous headroom (a too-low limit makes Mosaic fail); capped well under the
    # 64 MiB of physical VMEM on v7x.
    return int(min(max(2 * est + (8 << 20), 32 << 20), 60 << 20))


# ---------------------------------------------------------------------------
# Pass 1: 3x3 conv as one fat im2col matmul per tile + fused BN partial sums.
# ---------------------------------------------------------------------------
def conv_stats_kernel(x_ref, w_ref, mask_ref, y_ref, stats_ref, *, KH, KW, TH, Wo_p):
    # x_ref:     (1, Hp, Wp, Cp)       bf16  one image, lane-padded channels (resident per n)
    # w_ref:     (KH*KW*Cp, Coutp)     bf16  im2col-flattened weight, fully resident
    # mask_ref:  (1, TH, Wo_p, 1)      f32   1.0 for real output rows, 0.0 for padding
    # y_ref:     (1, TH, Wo_p, Coutp)  bf16  conv output tile (pre-BN)
    # stats_ref: (1, 1, 2, Coutp)      f32   per-tile [sum, sum_of_squares]
    t = pl.program_id(1)
    Cp = x_ref.shape[-1]
    Coutp = w_ref.shape[-1]
    TM = TH * Wo_p

    # Rows of the (already padded) input needed by this tile (KH-1 halo rows).
    xs = x_ref[0, pl.ds(t * TH, TH + KH - 1), :, :]            # (TH+KH-1, Wp, Cp)

    # im2col: KH*KW lane-aligned shifted views concatenated along the lane axis.
    taps = [xs[kh:kh + TH, kw:kw + Wo_p, :]
            for kh in range(KH) for kw in range(KW)]
    cols = jnp.concatenate(taps, axis=-1)                      # (TH, Wo_p, KH*KW*Cp)
    # Wo_p is a multiple of 8 -> this flatten is a sublane-aligned view (no repack).
    cols = cols.reshape(TM, KH * KW * Cp)

    # One fat MXU matmul: bf16 inputs, f32 accumulation.
    acc = jnp.dot(cols, w_ref[...], preferred_element_type=jnp.float32)   # (TM, Coutp)

    # Round once to the storage dtype; BN statistics are computed from the stored
    # values so the pass-2 affine is exactly consistent with them.
    y_bf16 = acc.astype(jnp.bfloat16)
    y_ref[...] = y_bf16.reshape(1, TH, Wo_p, Coutp)

    # BN partial sums fused into the matmul epilogue (tile stays on-chip).
    # mask is 0/1, so ym * ym == y^2 * mask.
    y3 = y_bf16.astype(jnp.float32).reshape(TH, Wo_p, Coutp)
    ym = y3 * mask_ref[0, :, :, :]
    s = jnp.sum(jnp.sum(ym, axis=0), axis=0, keepdims=True)          # (1, Coutp)
    s2 = jnp.sum(jnp.sum(ym * ym, axis=0), axis=0, keepdims=True)    # (1, Coutp)
    stats_ref[...] = jnp.concatenate([s, s2], axis=0).reshape(1, 1, 2, Coutp)


# ---------------------------------------------------------------------------
# Pass 2: fused BatchNorm affine + ReLU (pure streaming, fully parallel).
# ---------------------------------------------------------------------------
def bn_relu_kernel(y_ref, scale_ref, shift_ref, o_ref):
    y = y_ref[...].astype(jnp.float32)                        # (1, TH, Wo_p, Coutp)
    o_ref[...] = jnp.maximum(y * scale_ref[...] + shift_ref[...], 0.0).astype(o_ref.dtype)


def conv_bn_relu(x_nchw, w_oihw, gamma, beta, eps=1e-3, rows_per_tile_target=768):
    N, Cin, H, W = x_nchw.shape
    Cout, _, KH, KW = w_oihw.shape
    Ho, Wo = H - KH + 1, W - KW + 1

    Cp = _round_up(Cin, LANE)          # 80  -> 128 (lane-aligned taps)
    Coutp = _round_up(Cout, LANE)      # 192 -> 256 (lane-dense output)
    Wo_p = _round_up(Wo, SUBLANE)      # output width padded to a sublane multiple
    n_h_tiles = max(1, -(-(Ho * Wo_p) // rows_per_tile_target))
    TH = -(-Ho // n_h_tiles)           # output rows per tile
    Ho_p = TH * n_h_tiles
    Hp = Ho_p + KH - 1
    Wp = Wo_p + KW - 1
    TM = TH * Wo_p
    R = N * Ho * Wo                    # true per-channel element count for BN stats

    # ---- XLA-side layout plumbing: NCHW->NHWC, pad, cast to bf16 ----------------
    x_nhwc = jnp.transpose(x_nchw, (0, 2, 3, 1))
    x_nhwc = jnp.pad(x_nhwc, ((0, 0), (0, Hp - H), (0, Wp - W), (0, Cp - Cin)))
    x_nhwc = x_nhwc.astype(jnp.bfloat16)      # bf16 activations: halves x DMA bytes

    w_hwio = jnp.transpose(w_oihw, (2, 3, 1, 0)).astype(jnp.float32)
    w_hwio = jnp.pad(w_hwio, ((0, 0), (0, 0), (0, Cp - Cin), (0, Coutp - Cout)))
    w_flat = w_hwio.reshape(KH * KW * Cp, Coutp).astype(jnp.bfloat16)

    # 0/1 mask of output rows that are real (not Ho/Wo padding), per h-tile.
    hi = jnp.arange(Ho_p, dtype=jnp.int32).reshape(n_h_tiles, TH, 1, 1)
    wi = jnp.arange(Wo_p, dtype=jnp.int32).reshape(1, 1, Wo_p, 1)
    mask = jnp.logical_and(hi < Ho, wi < Wo).astype(jnp.float32)   # (n_h_tiles, TH, Wo_p, 1)

    # ---- Pass 1: conv + per-tile BN partial sums --------------------------------
    kern1 = functools.partial(conv_stats_kernel, KH=KH, KW=KW, TH=TH, Wo_p=Wo_p)
    flops1 = 2 * N * Ho_p * Wo_p * (KH * KW * Cp) * Coutp
    bytes1 = (N * Hp * Wp * Cp * 2 + KH * KW * Cp * Coutp * 2
              + N * Ho_p * Wo_p * Coutp * 2 + N * n_h_tiles * 2 * Coutp * 4)
    est1 = (2 * Hp * Wp * Cp * 2           # double-buffered image block (bf16)
            + KH * KW * Cp * Coutp * 2     # resident weight
            + 2 * TM * Coutp * 2           # double-buffered y output block (bf16)
            + TM * KH * KW * Cp * 2        # im2col buffer (bf16)
            + 3 * TM * Coutp * 4)          # f32 accumulator + temporaries
    y_pre, stats = pl.pallas_call(
        kern1,
        grid=(N, n_h_tiles),
        in_specs=[
            pl.BlockSpec((1, Hp, Wp, Cp), lambda n, t: (n, 0, 0, 0)),
            pl.BlockSpec((KH * KW * Cp, Coutp), lambda n, t: (0, 0)),
            pl.BlockSpec((1, TH, Wo_p, 1), lambda n, t: (t, 0, 0, 0)),
        ],
        out_specs=(
            pl.BlockSpec((1, TH, Wo_p, Coutp), lambda n, t: (n, t, 0, 0)),
            pl.BlockSpec((1, 1, 2, Coutp), lambda n, t: (n, t, 0, 0)),
        ),
        out_shape=(
            jax.ShapeDtypeStruct((N, Ho_p, Wo_p, Coutp), jnp.bfloat16),
            jax.ShapeDtypeStruct((N, n_h_tiles, 2, Coutp), jnp.float32),
        ),
        compiler_params=pltpu.CompilerParams(
            dimension_semantics=("parallel", "parallel"),
            vmem_limit_bytes=_vmem_limit_bytes(est1)),
        cost_estimate=pl.CostEstimate(flops=flops1, transcendentals=0,
                                      bytes_accessed=bytes1),
    )(x_nhwc, w_flat, mask)

    # ---- BN finalize (tiny XLA glue): combine per-tile partial sums -------------
    # Training-mode BatchNorm: biased variance over the batch, eps=1e-3.
    # NOTE: padded Cout channels have gamma=beta=mean=var=0 -> scale=shift=0, so their
    # (sliced-off) outputs are exactly 0; inv = 1/sqrt(eps) there is harmless.
    # TODO(synk): BatchNorm2d's running_mean/running_var momentum update (a
    # training-time side effect) is not emitted; only the forward output is computed.
    s = jnp.sum(stats[:, :, 0, :], axis=(0, 1))                # (Coutp,)
    s2 = jnp.sum(stats[:, :, 1, :], axis=(0, 1))
    mean = s / R
    var = jnp.maximum(s2 / R - mean * mean, 0.0)
    inv = jax.lax.rsqrt(var + eps)
    gamma_p = jnp.pad(gamma.astype(jnp.float32), (0, Coutp - Cout))
    beta_p = jnp.pad(beta.astype(jnp.float32), (0, Coutp - Cout))
    scale = (gamma_p * inv).reshape(1, 1, 1, Coutp)
    shift = (beta_p - mean * gamma_p * inv).reshape(1, 1, 1, Coutp)

    # ---- Pass 2: fused affine + ReLU ---------------------------------------------
    flops2 = 3 * N * Ho_p * Wo_p * Coutp
    bytes2 = N * Ho_p * Wo_p * Coutp * (2 + 4) + 2 * Coutp * 4
    est2 = (2 * TM * Coutp * 2             # double-buffered y input block (bf16)
            + 2 * TM * Coutp * 4           # double-buffered output block (f32)
            + TM * Coutp * 4               # f32 temporary
            + 4 * Coutp * 4)               # scale/shift
    out_p = pl.pallas_call(
        bn_relu_kernel,
        grid=(N, n_h_tiles),
        in_specs=[
            pl.BlockSpec((1, TH, Wo_p, Coutp), lambda n, t: (n, t, 0, 0)),
            pl.BlockSpec((1, 1, 1, Coutp), lambda n, t: (0, 0, 0, 0)),
            pl.BlockSpec((1, 1, 1, Coutp), lambda n, t: (0, 0, 0, 0)),
        ],
        out_specs=pl.BlockSpec((1, TH, Wo_p, Coutp), lambda n, t: (n, t, 0, 0)),
        out_shape=jax.ShapeDtypeStruct((N, Ho_p, Wo_p, Coutp), jnp.float32),
        compiler_params=pltpu.CompilerParams(
            dimension_semantics=("parallel", "parallel"),
            vmem_limit_bytes=_vmem_limit_bytes(est2)),
        cost_estimate=pl.CostEstimate(flops=flops2, transcendentals=0,
                                      bytes_accessed=bytes2),
    )(y_pre, scale, shift)

    # Slice off Ho/Wo/Cout padding and return NCHW.
    out = out_p[:, :Ho, :Wo, :Cout]
    return jnp.transpose(out, (0, 3, 1, 2))


def reference(x_nchw, w_oihw, gamma, beta, eps=1e-3):
    y = jax.lax.conv_general_dilated(
        x_nchw.astype(jnp.float32), w_oihw.astype(jnp.float32),
        window_strides=(1, 1), padding="VALID",
        dimension_numbers=("NCHW", "OIHW", "NCHW"),
        precision=jax.lax.Precision.HIGHEST)
    mean = y.mean(axis=(0, 2, 3), keepdims=True)
    var = ((y - mean) ** 2).mean(axis=(0, 2, 3), keepdims=True)
    yn = (y - mean) * jax.lax.rsqrt(var + eps)
    yn = yn * gamma.reshape(1, -1, 1, 1) + beta.reshape(1, -1, 1, 1)
    return jnp.maximum(yn, 0.0)


if __name__ == "__main__":
    key = jax.random.PRNGKey(0)
    k_x, k_w, k_g, k_b = jax.random.split(key, 4)

    # Small shapes consistent with the module: Cin=80, Cout=192, 3x3 kernel, stride 1.
    N, Cin, H, W = 2, 80, 14, 14
    Cout, KH, KW = 192, 3, 3

    x = jax.random.normal(k_x, (N, Cin, H, W), dtype=jnp.float32)
    w = jax.random.normal(k_w, (Cout, Cin, KH, KW), dtype=jnp.float32) * 0.05
    gamma = 1.0 + 0.1 * jax.random.normal(k_g, (Cout,), dtype=jnp.float32)
    beta = 0.1 * jax.random.normal(k_b, (Cout,), dtype=jnp.float32)

    fn = jax.jit(conv_bn_relu)
    out = jax.block_until_ready(fn(x, w, gamma, beta))
    ref = jax.block_until_ready(reference(x, w, gamma, beta))

    assert out.shape == (N, Cout, H - KH + 1, W - KW + 1), out.shape
    # bf16 MXU inputs + bf16-stored conv intermediate (f32 accumulation / f32 BN
    # statistics) -> looser tolerance than a pure-f32 pipeline.
    assert jnp.allclose(out, ref, rtol=2e-2, atol=2e-2), (
        "mismatch vs reference: max abs err "
        f"{float(jnp.max(jnp.abs(out - ref))):.4e}")

    print("KERNEL_OK")
</pallas_src>

<mosaic_0001>
module attributes {stable_mosaic.version = 11 : i64} {
  func.func @conv_stats_kernel(%arg0: i32, %arg1: i32, %arg2: memref<1x14x18x128xbf16, #tpu.memory_space<vmem>>, %arg3: memref<1152x256xbf16, #tpu.memory_space<vmem>>, %arg4: memref<1x12x16x1xf32, #tpu.memory_space<vmem>>, %arg5: memref<1x12x16x256xbf16, #tpu.memory_space<vmem>>, %arg6: memref<1x1x2x256xf32, #tpu.memory_space<vmem>>) attributes {dimension_semantics = [#tpu.dimension_semantics<parallel>, #tpu.dimension_semantics<parallel>], iteration_bounds = array<i64: 2, 1>, scalar_prefetch = 0 : i64, scratch_operands = 0 : i64, tpu.core_type = #tpu.core_type<tc>, window_params = [{transform_indices = @transform_0, window_bounds = array<i64: 1, 14, 18, 128>}, {pipeline_mode = #tpu.pipeline_mode<synchronous>, transform_indices = @transform_1, window_bounds = array<i64: 1152, 256>}, {transform_indices = @transform_2, window_bounds = array<i64: 1, 12, 16, 1>}, {transform_indices = @transform_3, window_bounds = array<i64: 1, 12, 16, 256>}, {transform_indices = @transform_4, window_bounds = array<i64: 1, 1, 2, 256>}]} {
    %c12_i32 = arith.constant 12 : i32
    %0 = arith.muli %arg1, %c12_i32 : i32
    %c0 = arith.constant 0 : index
    %1 = arith.index_cast %0 : i32 to index
    %c0_0 = arith.constant 0 : index
    %c0_1 = arith.constant 0 : index
    %2 = vector.load %arg2[%c0, %1, %c0_0, %c0_1] : memref<1x14x18x128xbf16, #tpu.memory_space<vmem>>, vector<1x14x18x128xbf16>
    %3 = vector.shape_cast %2 : vector<1x14x18x128xbf16> to vector<14x18x128xbf16>
    %4 = vector.extract_strided_slice %3 {offsets = [0, 0, 0], sizes = [12, 16, 128], strides = [1, 1, 1]} : vector<14x18x128xbf16> to vector<12x16x128xbf16>
    %5 = vector.extract_strided_slice %3 {offsets = [0, 1, 0], sizes = [12, 16, 128], strides = [1, 1, 1]} : vector<14x18x128xbf16> to vector<12x16x128xbf16>
    %6 = vector.extract_strided_slice %3 {offsets = [0, 2, 0], sizes = [12, 16, 128], strides = [1, 1, 1]} : vector<14x18x128xbf16> to vector<12x16x128xbf16>
    %7 = vector.extract_strided_slice %3 {offsets = [1, 0, 0], sizes = [12, 16, 128], strides = [1, 1, 1]} : vector<14x18x128xbf16> to vector<12x16x128xbf16>
    %8 = vector.extract_strided_slice %3 {offsets = [1, 1, 0], sizes = [12, 16, 128], strides = [1, 1, 1]} : vector<14x18x128xbf16> to vector<12x16x128xbf16>
    %9 = vector.extract_strided_slice %3 {offsets = [1, 2, 0], sizes = [12, 16, 128], strides = [1, 1, 1]} : vector<14x18x128xbf16> to vector<12x16x128xbf16>
    %10 = vector.extract_strided_slice %3 {offsets = [2, 0, 0], sizes = [12, 16, 128], strides = [1, 1, 1]} : vector<14x18x128xbf16> to vector<12x16x128xbf16>
    %11 = vector.extract_strided_slice %3 {offsets = [2, 1, 0], sizes = [12, 16, 128], strides = [1, 1, 1]} : vector<14x18x128xbf16> to vector<12x16x128xbf16>
    %12 = vector.extract_strided_slice %3 {offsets = [2, 2, 0], sizes = [12, 16, 128], strides = [1, 1, 1]} : vector<14x18x128xbf16> to vector<12x16x128xbf16>
    %13 = tpu.concatenate %4, %5, %6, %7, %8, %9, %10, %11, %12 in 2 : vector<12x16x128xbf16>, vector<12x16x128xbf16>, vector<12x16x128xbf16>, vector<12x16x128xbf16>, vector<12x16x128xbf16>, vector<12x16x128xbf16>, vector<12x16x128xbf16>, vector<12x16x128xbf16>, vector<12x16x128xbf16> -> vector<12x16x1152xbf16>
    %14 = vector.shape_cast %13 : vector<12x16x1152xbf16> to vector<192x1152xbf16>
    %c0_2 = arith.constant 0 : index
    %c0_3 = arith.constant 0 : index
    %15 = vector.load %arg3[%c0_2, %c0_3] : memref<1152x256xbf16, #tpu.memory_space<vmem>>, vector<1152x256xbf16>
    %cst = arith.constant dense<0.000000e+00> : vector<192x256xf32>
    %16 = tpu.matmul %14, %15, %cst {dimension_numbers = #tpu.dot_dimension_numbers<[1], [0], [0], [1], [0, 0, 1, 1], [], []>} : vector<192x1152xbf16>, vector<1152x256xbf16>, vector<192x256xf32> -> vector<192x256xf32>
    %17 = arith.truncf %16 : vector<192x256xf32> to vector<192x256xbf16>
    %18 = vector.shape_cast %17 : vector<192x256xbf16> to vector<1x12x16x256xbf16>
    %c0_4 = arith.constant 0 : index
    %c0_5 = arith.constant 0 : index
    %c0_6 = arith.constant 0 : index
    %c0_7 = arith.constant 0 : index
    %19 = vector.load %arg5[%c0_4, %c0_5, %c0_6, %c0_7] : memref<1x12x16x256xbf16, #tpu.memory_space<vmem>>, vector<1x12x16x256xbf16>
    tpu.vector_store %arg5[%c0_4, %c0_5, %c0_6, %c0_7], %18 {strides = array<i32>} : memref<1x12x16x256xbf16, #tpu.memory_space<vmem>>, vector<1x12x16x256xbf16>,
    %20 = arith.extf %17 : vector<192x256xbf16> to vector<192x256xf32>
    %21 = vector.shape_cast %20 : vector<192x256xf32> to vector<12x16x256xf32>
    %c0_8 = arith.constant 0 : index
    %c0_9 = arith.constant 0 : index
    %c0_10 = arith.constant 0 : index
    %c0_11 = arith.constant 0 : index
    %22 = vector.load %arg4[%c0_8, %c0_9, %c0_10, %c0_11] : memref<1x12x16x1xf32, #tpu.memory_space<vmem>>, vector<1x12x16x1xf32>
    %23 = vector.shape_cast %22 : vector<1x12x16x1xf32> to vector<12x16x1xf32>
    %24 = vector.broadcast %23 : vector<12x16x1xf32> to vector<12x16x256xf32>
    %25 = arith.mulf %21, %24 : vector<12x16x256xf32>
    %cst_12 = arith.constant dense<0.000000e+00> : vector<16x256xf32>
    %26 = vector.multi_reduction <add>, %25, %cst_12 [0] : vector<12x16x256xf32> to vector<16x256xf32>
    %cst_13 = arith.constant dense<0.000000e+00> : vector<256xf32>
    %27 = vector.multi_reduction <add>, %26, %cst_13 [0] : vector<16x256xf32> to vector<256xf32>
    %28 = vector.shape_cast %27 : vector<256xf32> to vector<1x256xf32>
    %29 = arith.mulf %25, %25 : vector<12x16x256xf32>
    %cst_14 = arith.constant dense<0.000000e+00> : vector<16x256xf32>
    %30 = vector.multi_reduction <add>, %29, %cst_14 [0] : vector<12x16x256xf32> to vector<16x256xf32>
    %cst_15 = arith.constant dense<0.000000e+00> : vector<256xf32>
    %31 = vector.multi_reduction <add>, %30, %cst_15 [0] : vector<16x256xf32> to vector<256xf32>
    %32 = vector.shape_cast %31 : vector<256xf32> to vector<1x256xf32>
    %33 = tpu.concatenate %28, %32 in 0 : vector<1x256xf32>, vector<1x256xf32> -> vector<2x256xf32>
    %34 = vector.shape_cast %33 : vector<2x256xf32> to vector<1x1x2x256xf32>
    %c0_16 = arith.constant 0 : index
    %c0_17 = arith.constant 0 : index
    %c0_18 = arith.constant 0 : index
    %c0_19 = arith.constant 0 : index
    %35 = vector.load %arg6[%c0_16, %c0_17, %c0_18, %c0_19] : memref<1x1x2x256xf32, #tpu.memory_space<vmem>>, vector<1x1x2x256xf32>
    tpu.vector_store %arg6[%c0_16, %c0_17, %c0_18, %c0_19], %34 {strides = array<i32>} : memref<1x1x2x256xf32, #tpu.memory_space<vmem>>, vector<1x1x2x256xf32>,
    return
  }
  func.func @transform_0(%arg0: i32, %arg1: i32) -> (i32, i32, i32, i32) {
    %c0_i32 = arith.constant 0 : i32
    %c0_i32_0 = arith.constant 0 : i32
    %c0_i32_1 = arith.constant 0 : i32
    %c0_i32_2 = arith.constant 0 : i32
    return %arg0, %c0_i32, %c0_i32_0, %c0_i32_1 : i32, i32, i32, i32
  }
  func.func @transform_1(%arg0: i32, %arg1: i32) -> (i32, i32) {
    %c0_i32 = arith.constant 0 : i32
    %c0_i32_0 = arith.constant 0 : i32
    %c0_i32_1 = arith.constant 0 : i32
    return %c0_i32, %c0_i32_0 : i32, i32
  }
  func.func @transform_2(%arg0: i32, %arg1: i32) -> (i32, i32, i32, i32) {
    %c0_i32 = arith.constant 0 : i32
    %c0_i32_0 = arith.constant 0 : i32
    %c0_i32_1 = arith.constant 0 : i32
    %c0_i32_2 = arith.constant 0 : i32
    return %arg1, %c0_i32, %c0_i32_0, %c0_i32_1 : i32, i32, i32, i32
  }
  func.func @transform_3(%arg0: i32, %arg1: i32) -> (i32, i32, i32, i32) {
    %c0_i32 = arith.constant 0 : i32
    %c0_i32_0 = arith.constant 0 : i32
    %c0_i32_1 = arith.constant 0 : i32
    return %arg0, %arg1, %c0_i32, %c0_i32_0 : i32, i32, i32, i32
  }
  func.func @transform_4(%arg0: i32, %arg1: i32) -> (i32, i32, i32, i32) {
    %c0_i32 = arith.constant 0 : i32
    %c0_i32_0 = arith.constant 0 : i32
    %c0_i32_1 = arith.constant 0 : i32
    return %arg0, %arg1, %c0_i32, %c0_i32_0 : i32, i32, i32, i32
  }
}

module attributes {stable_mosaic.version = 11 : i64} {
  func.func @bn_relu_kernel(%arg0: i32, %arg1: i32, %arg2: memref<1x12x16x256xbf16, #tpu.memory_space<vmem>>, %arg3: memref<1x1x1x256xf32, #tpu.memory_space<vmem>>, %arg4: memref<1x1x1x256xf32, #tpu.memory_space<vmem>>, %arg5: memref<1x12x16x256xf32, #tpu.memory_space<vmem>>) attributes {dimension_semantics = [#tpu.dimension_semantics<parallel>, #tpu.dimension_semantics<parallel>], iteration_bounds = array<i64: 2, 1>, scalar_prefetch = 0 : i64, scratch_operands = 0 : i64, tpu.core_type = #tpu.core_type<tc>, window_params = [{transform_indices = @transform_0, window_bounds = array<i64: 1, 12, 16, 256>}, {pipeline_mode = #tpu.pipeline_mode<synchronous>, transform_indices = @transform_1, window_bounds = array<i64: 1, 1, 1, 256>}, {pipeline_mode = #tpu.pipeline_mode<synchronous>, transform_indices = @transform_2, window_bounds = array<i64: 1, 1, 1, 256>}, {transform_indices = @transform_3, window_bounds = array<i64: 1, 12, 16, 256>}]} {
    %c0 = arith.constant 0 : index
    %c0_0 = arith.constant 0 : index
    %c0_1 = arith.constant 0 : index
    %c0_2 = arith.constant 0 : index
    %0 = vector.load %arg2[%c0, %c0_0, %c0_1, %c0_2] : memref<1x12x16x256xbf16, #tpu.memory_space<vmem>>, vector<1x12x16x256xbf16>
    %1 = arith.extf %0 : vector<1x12x16x256xbf16> to vector<1x12x16x256xf32>
    %c0_3 = arith.constant 0 : index
    %c0_4 = arith.constant 0 : index
    %c0_5 = arith.constant 0 : index
    %c0_6 = arith.constant 0 : index
    %2 = vector.load %arg3[%c0_3, %c0_4, %c0_5, %c0_6] : memref<1x1x1x256xf32, #tpu.memory_space<vmem>>, vector<1x1x1x256xf32>
    %3 = vector.broadcast %2 : vector<1x1x1x256xf32> to vector<1x12x16x256xf32>
    %4 = arith.mulf %1, %3 : vector<1x12x16x256xf32>
    %c0_7 = arith.constant 0 : index
    %c0_8 = arith.constant 0 : index
    %c0_9 = arith.constant 0 : index
    %c0_10 = arith.constant 0 : index
    %5 = vector.load %arg4[%c0_7, %c0_8, %c0_9, %c0_10] : memref<1x1x1x256xf32, #tpu.memory_space<vmem>>, vector<1x1x1x256xf32>
    %6 = vector.broadcast %5 : vector<1x1x1x256xf32> to vector<1x12x16x256xf32>
    %7 = arith.addf %4, %6 : vector<1x12x16x256xf32>
    %cst = arith.constant 0.000000e+00 : f32
    %8 = vector.broadcast %cst : f32 to vector<1x12x16x256xf32>
    %9 = arith.maximumf %7, %8 : vector<1x12x16x256xf32>
    %c0_11 = arith.constant 0 : index
    %c0_12 = arith.constant 0 : index
    %c0_13 = arith.constant 0 : index
    %c0_14 = arith.constant 0 : index
    %10 = vector.load %arg5[%c0_11, %c0_12, %c0_13, %c0_14] : memref<1x12x16x256xf32, #tpu.memory_space<vmem>>, vector<1x12x16x256xf32>
    tpu.vector_store %arg5[%c0_11, %c0_12, %c0_13, %c0_14], %9 {strides = array<i32>} : memref<1x12x16x256xf32, #tpu.memory_space<vmem>>, vector<1x12x16x256xf32>,
    return
  }
  func.func @transform_0(%arg0: i32, %arg1: i32) -> (i32, i32, i32, i32) {
    %c0_i32 = arith.constant 0 : i32
    %c0_i32_0 = arith.constant 0 : i32
    %c0_i32_1 = arith.constant 0 : i32
    return %arg0, %arg1, %c0_i32, %c0_i32_0 : i32, i32, i32, i32
  }
  func.func @transform_1(%arg0: i32, %arg1: i32) -> (i32, i32, i32, i32) {
    %c0_i32 = arith.constant 0 : i32
    %c0_i32_0 = arith.constant 0 : i32
    %c0_i32_1 = arith.constant 0 : i32
    %c0_i32_2 = arith.constant 0 : i32
    %c0_i32_3 = arith.constant 0 : i32
    return %c0_i32, %c0_i32_0, %c0_i32_1, %c0_i32_2 : i32, i32, i32, i32
  }
  func.func @transform_2(%arg0: i32, %arg1: i32) -> (i32, i32, i32, i32) {
    %c0_i32 = arith.constant 0 : i32
    %c0_i32_0 = arith.constant 0 : i32
    %c0_i32_1 = arith.constant 0 : i32
    %c0_i32_2 = arith.constant 0 : i32
    %c0_i32_3 = arith.constant 0 : i32
    return %c0_i32, %c0_i32_0, %c0_i32_1, %c0_i32_2 : i32, i32, i32, i32
  }
  func.func @transform_3(%arg0: i32, %arg1: i32) -> (i32, i32, i32, i32) {
    %c0_i32 = arith.constant 0 : i32
    %c0_i32_0 = arith.constant 0 : i32
    %c0_i32_1 = arith.constant 0 : i32
    return %arg0, %arg1, %c0_i32, %c0_i32_0 : i32, i32, i32, i32
  }
}

</mosaic_0001>

<bundles_post_ra>
// kernel: conv_bn_relu.3
= control target key start
LH: loop header
LB: loop body
LE: loop exit
PB: predicated region body
PF: predicated region fallthrough
CT: control target
= control target key end

     0   :  { %s678_s12 = smov 0   ;;  %s680_s13 = smov 0   ;;  %s901_s0 = inlined_call_operand.vmem [shape: bf16[2,12,16,256], index: 0, kind: input, shape index: {}]   ;;  %s902_s1 = inlined_call_operand.vmem [shape: f32[1,1,1,256], index: 1, kind: input, shape index: {}]   ;;  %s903_s2 = inlined_call_operand.vmem [shape: f32[1,1,1,256], index: 2, kind: input, shape index: {}]   ;;  %s904_s3 = inlined_call_operand.vmem [shape: f32[2,12,16,256], index: 3, kind: output, shape index: {}]  }
   0x1   :  { %s682_s14 = smov 0  }
   0x2 LB: > { %s25_s15 = sadd.s32 1, %s652_s13  ;;  %p603_p0 = scmp.ge.s32.totalorder %s656_s14, 1  ;;  %s656_s14 = sphi %s682_s14, %s13_s14   ;;  %s652_s13 = sphi %s680_s13, %s906_s13   ;;  %s648_s12 = sphi %s678_s12, %s905_s12  }
   0x3   : > { %p27_p1 = scmp.ge.s32.totalorder %s25_s15, 2  ;;  %p159_p2 = scmp.lt.s32.totalorder %s656_s14, 3 }
   0x5   : > { %s908_s15 = smov (%p27_p1, %s25_s15), 0  ;;  %p160_p3 = pnand %p603_p0, %p159_p2 }
   0x6   : > { %p194_p4 = scmp.lt.s32.totalorder (!%p160_p3), %s648_s12, 1  ;;  %v289_v0 = vlaneseq (!%p160_p3)  ;;  %v287_v2 = vld [vmem:[%s902_s1] sm:$0x3] (!%p160_p3) }
   0x7   : > { %163 = sbr.rel (%p160_p3) target bundleno = 71 (0x47), region = 32  ;;  %v347_v4 = vld [vmem:[%s903_s2] sm:$0x3] (!%p160_p3) }
   0x8   : > { %v290_v1 = vshrl.u32 (!%p160_p3), %v289_v0, 7 }
   0xa   : > { %v291_v3 = vsub.s32 (!%p160_p3), 0, %v290_v1  ;;  %v295_v5 = vsub.s32 (!%p160_p3), 1, %v290_v1 }
   0xc   : > { %v710_v6 = vrot.slane (!%p160_p3), %v287_v2, %v291_v3  ;;  %v712_v7 = vrot.slane (!%p160_p3), %v287_v2, %v295_v5  ;;  %v715_v9 = vrot.slane (!%p160_p3), %v347_v4, %v291_v3  ;;  %v717_v10 = vrot.slane (!%p160_p3), %v347_v4, %v295_v5 }
   0xe   : > { %s910_s12 = smov (!%p194_p4, %s648_s12), 1 }
   0xf   : > { %s608_s18 = smul.u32 192, %s910_s12 }
  0x10   : > { %s609_s24 = smul.u32 384, %s910_s12 }
  0x11   : > { %s708_s23 = scalar_lea.vmem %s901_s0, %s608_s18 }
  0x12   : > { %v215_v8 = vld [vmem:[%s708_s23] sm:$0xff]  ;;  %v216_v11 = vld [vmem:[%s708_s23 + $0x8] sm:$0xff]  ;;  %v217_v12 = vld [vmem:[%s708_s23 + $0x10] sm:$0xff]  ;;  %s738_s27 = scalar_lea.vmem %s904_s3, %s609_s24 }
  0x13   : > { %v239_v13 = vunpack.c.l.bf16 %v215_v8  ;;  %v240_v14 = vunpack.c.h.bf16 %v215_v8  ;;  %v241_v15 = vunpack.c.l.bf16 %v216_v11  ;;  %v242_v16 = vunpack.c.h.bf16 %v216_v11  ;;  %v218_v17 = vld [vmem:[%s708_s23 + $0x18] sm:$0xff]  ;;  %v219_v38 = vld [vmem:[%s708_s23 + $0x20] sm:$0xff]  ;;  %v220_v39 = vld [vmem:[%s708_s23 + $0x28] sm:$0xff] }
  0x14   : > { %v243_v18 = vunpack.c.l.bf16 %v217_v12  ;;  %v244_v19 = vunpack.c.h.bf16 %v217_v12  ;;  %v245_v20 = vunpack.c.l.bf16 %v218_v17  ;;  %v246_v21 = vunpack.c.h.bf16 %v218_v17  ;;  %v221_v44 = vld [vmem:[%s708_s23 + $0x30] sm:$0xff]  ;;  %v222_v45 = vld [vmem:[%s708_s23 + $0x38] sm:$0xff] }
  0x15   : > { %v299_v22 = vmul.f32 %v710_v6, %v239_v13  ;;  %v300_v23 = vmul.f32 %v712_v7, %v240_v14  ;;  %v301_v24 = vmul.f32 %v710_v6, %v241_v15  ;;  %v302_v25 = vmul.f32 %v712_v7, %v242_v16  ;;  %v223_v14 = vld [vmem:[%s708_s23 + $0x40] sm:$0xff]  ;;  %v224_v15 = vld [vmem:[%s708_s23 + $0x48] sm:$0xff] }
  0x16   : > { %v303_v26 = vmul.f32 %v710_v6, %v243_v18  ;;  %v304_v27 = vmul.f32 %v712_v7, %v244_v19  ;;  %v305_v28 = vmul.f32 %v710_v6, %v245_v20  ;;  %v306_v29 = vmul.f32 %v712_v7, %v246_v21  ;;  %v225_v20 = vld [vmem:[%s708_s23 + $0x50] sm:$0xff]  ;;  %v226_v21 = vld [vmem:[%s708_s23 + $0x58] sm:$0xff] }
  0x17   : > { %v359_v30 = vadd.f32 %v715_v9, %v299_v22  ;;  %v360_v31 = vadd.f32 %v717_v10, %v300_v23  ;;  %v361_v32 = vadd.f32 %v715_v9, %v301_v24  ;;  %v362_v33 = vadd.f32 %v717_v10, %v302_v25 }
  0x18   : > { %v363_v34 = vadd.f32 %v715_v9, %v303_v26  ;;  %v364_v35 = vadd.f32 %v717_v10, %v304_v27  ;;  %v365_v36 = vadd.f32 %v715_v9, %v305_v28  ;;  %v366_v37 = vadd.f32 %v717_v10, %v306_v29 }
  0x19   : > { %v407_v40 = vmax.f32 %v359_v30, 0.0  ;;  %v408_v41 = vmax.f32 %v360_v31, 0.0  ;;  %v409_v42 = vmax.f32 %v361_v32, 0.0  ;;  %v410_v43 = vmax.f32 %v362_v33, 0.0 }
  0x1a   : > { %v411_v46 = vmax.f32 %v363_v34, 0.0  ;;  %v412_v47 = vmax.f32 %v364_v35, 0.0  ;;  %v413_v48 = vmax.f32 %v365_v36, 0.0  ;;  %v414_v49 = vmax.f32 %v366_v37, 0.0 }
  0x1b   : > { %455 = vst [vmem:[%s738_s27] sm:$0xff] %v407_v40  ;;  %456 = vst [vmem:[%s738_s27 + $0x8] sm:$0xff] %v408_v41  ;;  %v247_v50 = vunpack.c.l.bf16 %v219_v38  ;;  %v248_v51 = vunpack.c.h.bf16 %v219_v38  ;;  %v249_v52 = vunpack.c.l.bf16 %v220_v39  ;;  %v250_v53 = vunpack.c.h.bf16 %v220_v39 }
  0x1c   : > { %457 = vst [vmem:[%s738_s27 + $0x10] sm:$0xff] %v409_v42  ;;  %458 = vst [vmem:[%s738_s27 + $0x18] sm:$0xff] %v410_v43  ;;  %v251_v54 = vunpack.c.l.bf16 %v221_v44  ;;  %v252_v55 = vunpack.c.h.bf16 %v221_v44  ;;  %v253_v56 = vunpack.c.l.bf16 %v222_v45  ;;  %v254_v57 = vunpack.c.h.bf16 %v222_v45 }
  0x1d   : > { %459 = vst [vmem:[%s738_s27 + $0x20] sm:$0xff] %v411_v46  ;;  %460 = vst [vmem:[%s738_s27 + $0x28] sm:$0xff] %v412_v47  ;;  %v307_v58 = vmul.f32 %v710_v6, %v247_v50  ;;  %v308_v59 = vmul.f32 %v712_v7, %v248_v51  ;;  %v309_v60 = vmul.f32 %v710_v6, %v249_v52  ;;  %v255_v26 = vunpack.c.l.bf16 %v223_v14  ;;  %v227_v50 = vld [vmem:[%s708_s23 + $0x60] sm:$0xff]  ;;  %v228_v51 = vld [vmem:[%s708_s23 + $0x68] sm:$0xff] }
  0x1e   : > { %461 = vst [vmem:[%s738_s27 + $0x30] sm:$0xff] %v413_v48  ;;  %462 = vst [vmem:[%s738_s27 + $0x38] sm:$0xff] %v414_v49  ;;  %v310_v61 = vmul.f32 %v712_v7, %v250_v53  ;;  %v311_v62 = vmul.f32 %v710_v6, %v251_v54  ;;  %v312_v63 = vmul.f32 %v712_v7, %v252_v55  ;;  %v256_v27 = vunpack.c.h.bf16 %v223_v14 }
  0x1f   : > { %v313_v0 = vmul.f32 %v710_v6, %v253_v56  ;;  %v314_v1 = vmul.f32 %v712_v7, %v254_v57  ;;  %v367_v2 = vadd.f32 %v715_v9, %v307_v58  ;;  %v368_v3 = vadd.f32 %v717_v10, %v308_v59  ;;  %v229_v56 = vld [vmem:[%s708_s23 + $0x70] sm:$0xff]  ;;  %v230_v57 = vld [vmem:[%s708_s23 + $0x78] sm:$0xff] }
  0x20   : > { %v369_v4 = vadd.f32 %v715_v9, %v309_v60  ;;  %v370_v5 = vadd.f32 %v717_v10, %v310_v61  ;;  %v371_v8 = vadd.f32 %v715_v9, %v311_v62  ;;  %v372_v11 = vadd.f32 %v717_v10, %v312_v63 }
  0x21   : > { %v373_v12 = vadd.f32 %v715_v9, %v313_v0  ;;  %v374_v13 = vadd.f32 %v717_v10, %v314_v1  ;;  %v415_v16 = vmax.f32 %v367_v2, 0.0  ;;  %v416_v17 = vmax.f32 %v368_v3, 0.0 }
  0x22   : > { %v417_v18 = vmax.f32 %v369_v4, 0.0  ;;  %v418_v19 = vmax.f32 %v370_v5, 0.0  ;;  %v419_v22 = vmax.f32 %v371_v8, 0.0  ;;  %v420_v23 = vmax.f32 %v372_v11, 0.0 }
  0x23   : > { %v421_v24 = vmax.f32 %v373_v12, 0.0  ;;  %v422_v25 = vmax.f32 %v374_v13, 0.0  ;;  %463 = vst [vmem:[%s738_s27 + $0x40] sm:$0xff] %v415_v16  ;;  %464 = vst [vmem:[%s738_s27 + $0x48] sm:$0xff] %v416_v17  ;;  %v257_v28 = vunpack.c.l.bf16 %v224_v15  ;;  %v258_v29 = vunpack.c.h.bf16 %v224_v15 }
  0x24   : > { %465 = vst [vmem:[%s738_s27 + $0x50] sm:$0xff] %v417_v18  ;;  %466 = vst [vmem:[%s738_s27 + $0x58] sm:$0xff] %v418_v19  ;;  %v259_v30 = vunpack.c.l.bf16 %v225_v20  ;;  %v260_v31 = vunpack.c.h.bf16 %v225_v20  ;;  %v261_v32 = vunpack.c.l.bf16 %v226_v21  ;;  %v262_v33 = vunpack.c.h.bf16 %v226_v21 }
  0x25   : > { %467 = vst [vmem:[%s738_s27 + $0x60] sm:$0xff] %v419_v22  ;;  %468 = vst [vmem:[%s738_s27 + $0x68] sm:$0xff] %v420_v23  ;;  %v315_v34 = vmul.f32 %v710_v6, %v255_v26  ;;  %v316_v35 = vmul.f32 %v712_v7, %v256_v27  ;;  %v317_v36 = vmul.f32 %v710_v6, %v257_v28  ;;  %v263_v62 = vunpack.c.l.bf16 %v227_v50  ;;  %v231_v26 = vld [vmem:[%s708_s23 + $0x80] sm:$0xff]  ;;  %v232_v27 = vld [vmem:[%s708_s23 + $0x88] sm:$0xff] }
  0x26   : > { %469 = vst [vmem:[%s738_s27 + $0x70] sm:$0xff] %v421_v24  ;;  %470 = vst [vmem:[%s738_s27 + $0x78] sm:$0xff] %v422_v25  ;;  %v318_v37 = vmul.f32 %v712_v7, %v258_v29  ;;  %v319_v38 = vmul.f32 %v710_v6, %v259_v30  ;;  %v320_v39 = vmul.f32 %v712_v7, %v260_v31  ;;  %v264_v63 = vunpack.c.h.bf16 %v227_v50 }
  0x27   : > { %v321_v40 = vmul.f32 %v710_v6, %v261_v32  ;;  %v322_v41 = vmul.f32 %v712_v7, %v262_v33  ;;  %v375_v42 = vadd.f32 %v715_v9, %v315_v34  ;;  %v376_v43 = vadd.f32 %v717_v10, %v316_v35  ;;  %v233_v32 = vld [vmem:[%s708_s23 + $0x90] sm:$0xff]  ;;  %v234_v33 = vld [vmem:[%s708_s23 + $0x98] sm:$0xff] }
  0x28   : > { %v377_v44 = vadd.f32 %v715_v9, %v317_v36  ;;  %v378_v45 = vadd.f32 %v717_v10, %v318_v37  ;;  %v379_v46 = vadd.f32 %v715_v9, %v319_v38  ;;  %v380_v47 = vadd.f32 %v717_v10, %v320_v39 }
  0x29   : > { %v381_v48 = vadd.f32 %v715_v9, %v321_v40  ;;  %v382_v49 = vadd.f32 %v717_v10, %v322_v41  ;;  %v423_v52 = vmax.f32 %v375_v42, 0.0  ;;  %v424_v53 = vmax.f32 %v376_v43, 0.0 }
  0x2a   : > { %v425_v54 = vmax.f32 %v377_v44, 0.0  ;;  %v426_v55 = vmax.f32 %v378_v45, 0.0  ;;  %v427_v58 = vmax.f32 %v379_v46, 0.0  ;;  %v428_v59 = vmax.f32 %v380_v47, 0.0 }
  0x2b   : > { %v429_v60 = vmax.f32 %v381_v48, 0.0  ;;  %v430_v61 = vmax.f32 %v382_v49, 0.0  ;;  %471 = vst [vmem:[%s738_s27 + $0x80] sm:$0xff] %v423_v52  ;;  %472 = vst [vmem:[%s738_s27 + $0x88] sm:$0xff] %v424_v53  ;;  %v265_v0 = vunpack.c.l.bf16 %v228_v51  ;;  %v266_v1 = vunpack.c.h.bf16 %v228_v51 }
  0x2c   : > { %473 = vst [vmem:[%s738_s27 + $0x90] sm:$0xff] %v425_v54  ;;  %474 = vst [vmem:[%s738_s27 + $0x98] sm:$0xff] %v426_v55  ;;  %v267_v2 = vunpack.c.l.bf16 %v229_v56  ;;  %v268_v3 = vunpack.c.h.bf16 %v229_v56  ;;  %v269_v4 = vunpack.c.l.bf16 %v230_v57  ;;  %v270_v5 = vunpack.c.h.bf16 %v230_v57 }
  0x2d   : > { %475 = vst [vmem:[%s738_s27 + $0xa0] sm:$0xff] %v427_v58  ;;  %476 = vst [vmem:[%s738_s27 + $0xa8] sm:$0xff] %v428_v59  ;;  %v323_v8 = vmul.f32 %v710_v6, %v263_v62  ;;  %v324_v11 = vmul.f32 %v712_v7, %v264_v63  ;;  %v325_v12 = vmul.f32 %v710_v6, %v265_v0  ;;  %v271_v38 = vunpack.c.l.bf16 %v231_v26  ;;  %v235_v62 = vld [vmem:[%s708_s23 + $0xa0] sm:$0xff]  ;;  %v236_v63 = vld [vmem:[%s708_s23 + $0xa8] sm:$0xff] }
  0x2e   : > { %477 = vst [vmem:[%s738_s27 + $0xb0] sm:$0xff] %v429_v60  ;;  %478 = vst [vmem:[%s738_s27 + $0xb8] sm:$0xff] %v430_v61  ;;  %v326_v13 = vmul.f32 %v712_v7, %v266_v1  ;;  %v327_v14 = vmul.f32 %v710_v6, %v267_v2  ;;  %v328_v15 = vmul.f32 %v712_v7, %v268_v3  ;;  %v272_v39 = vunpack.c.h.bf16 %v231_v26 }
  0x2f   : > { %v329_v16 = vmul.f32 %v710_v6, %v269_v4  ;;  %v330_v17 = vmul.f32 %v712_v7, %v270_v5  ;;  %v383_v18 = vadd.f32 %v715_v9, %v323_v8  ;;  %v384_v19 = vadd.f32 %v717_v10, %v324_v11  ;;  %v237_v4 = vld [vmem:[%s708_s23 + $0xb0] sm:$0xff]  ;;  %v238_v5 = vld [vmem:[%s708_s23 + $0xb8] sm:$0xff] }
  0x30   : > { %v385_v20 = vadd.f32 %v715_v9, %v325_v12  ;;  %v386_v21 = vadd.f32 %v717_v10, %v326_v13  ;;  %v387_v22 = vadd.f32 %v715_v9, %v327_v14  ;;  %v388_v23 = vadd.f32 %v717_v10, %v328_v15 }
  0x31   : > { %v389_v24 = vadd.f32 %v715_v9, %v329_v16  ;;  %v390_v25 = vadd.f32 %v717_v10, %v330_v17  ;;  %v431_v28 = vmax.f32 %v383_v18, 0.0  ;;  %v432_v29 = vmax.f32 %v384_v19, 0.0 }
  0x32   : > { %v433_v30 = vmax.f32 %v385_v20, 0.0  ;;  %v434_v31 = vmax.f32 %v386_v21, 0.0  ;;  %v435_v34 = vmax.f32 %v387_v22, 0.0  ;;  %v436_v35 = vmax.f32 %v388_v23, 0.0 }
  0x33   : > { %v437_v36 = vmax.f32 %v389_v24, 0.0  ;;  %v438_v37 = vmax.f32 %v390_v25, 0.0  ;;  %479 = vst [vmem:[%s738_s27 + $0xc0] sm:$0xff] %v431_v28  ;;  %480 = vst [vmem:[%s738_s27 + $0xc8] sm:$0xff] %v432_v29  ;;  %v273_v40 = vunpack.c.l.bf16 %v232_v27  ;;  %v274_v41 = vunpack.c.h.bf16 %v232_v27 }
  0x34   : > { %481 = vst [vmem:[%s738_s27 + $0xd0] sm:$0xff] %v433_v30  ;;  %482 = vst [vmem:[%s738_s27 + $0xd8] sm:$0xff] %v434_v31  ;;  %v275_v42 = vunpack.c.l.bf16 %v233_v32  ;;  %v276_v43 = vunpack.c.h.bf16 %v233_v32  ;;  %v277_v44 = vunpack.c.l.bf16 %v234_v33  ;;  %v278_v45 = vunpack.c.h.bf16 %v234_v33 }
  0x35   : > { %483 = vst [vmem:[%s738_s27 + $0xe0] sm:$0xff] %v435_v34  ;;  %484 = vst [vmem:[%s738_s27 + $0xe8] sm:$0xff] %v436_v35  ;;  %v331_v46 = vmul.f32 %v710_v6, %v271_v38  ;;  %v332_v47 = vmul.f32 %v712_v7, %v272_v39  ;;  %v333_v48 = vmul.f32 %v710_v6, %v273_v40  ;;  %v279_v14 = vunpack.c.l.bf16 %v235_v62 }
  0x36   : > { %485 = vst [vmem:[%s738_s27 + $0xf0] sm:$0xff] %v437_v36  ;;  %486 = vst [vmem:[%s738_s27 + $0xf8] sm:$0xff] %v438_v37  ;;  %v334_v49 = vmul.f32 %v712_v7, %v274_v41  ;;  %v335_v50 = vmul.f32 %v710_v6, %v275_v42  ;;  %v336_v51 = vmul.f32 %v712_v7, %v276_v43  ;;  %v280_v15 = vunpack.c.h.bf16 %v235_v62 }
  0x37   : > { %v337_v52 = vmul.f32 %v710_v6, %v277_v44  ;;  %v338_v53 = vmul.f32 %v712_v7, %v278_v45  ;;  %v391_v54 = vadd.f32 %v715_v9, %v331_v46  ;;  %v392_v55 = vadd.f32 %v717_v10, %v332_v47 }
  0x38   : > { %v393_v56 = vadd.f32 %v715_v9, %v333_v48  ;;  %v394_v57 = vadd.f32 %v717_v10, %v334_v49  ;;  %v395_v58 = vadd.f32 %v715_v9, %v335_v50  ;;  %v396_v59 = vadd.f32 %v717_v10, %v336_v51 }
  0x39   : > { %v397_v60 = vadd.f32 %v715_v9, %v337_v52  ;;  %v398_v61 = vadd.f32 %v717_v10, %v338_v53  ;;  %v439_v0 = vmax.f32 %v391_v54, 0.0  ;;  %v440_v1 = vmax.f32 %v392_v55, 0.0 }
  0x3a   : > { %v441_v2 = vmax.f32 %v393_v56, 0.0  ;;  %v442_v3 = vmax.f32 %v394_v57, 0.0  ;;  %v443_v8 = vmax.f32 %v395_v58, 0.0  ;;  %v444_v11 = vmax.f32 %v396_v59, 0.0 }
  0x3b   : > { %v445_v12 = vmax.f32 %v397_v60, 0.0  ;;  %v446_v13 = vmax.f32 %v398_v61, 0.0  ;;  %487 = vst [vmem:[%s738_s27 + $0x100] sm:$0xff] %v439_v0  ;;  %488 = vst [vmem:[%s738_s27 + $0x108] sm:$0xff] %v440_v1  ;;  %v281_v16 = vunpack.c.l.bf16 %v236_v63  ;;  %v282_v17 = vunpack.c.h.bf16 %v236_v63 }
  0x3c   : > { %489 = vst [vmem:[%s738_s27 + $0x110] sm:$0xff] %v441_v2  ;;  %490 = vst [vmem:[%s738_s27 + $0x118] sm:$0xff] %v442_v3  ;;  %v283_v18 = vunpack.c.l.bf16 %v237_v4  ;;  %v284_v19 = vunpack.c.h.bf16 %v237_v4  ;;  %v285_v20 = vunpack.c.l.bf16 %v238_v5  ;;  %v286_v21 = vunpack.c.h.bf16 %v238_v5 }
  0x3d   : > { %491 = vst [vmem:[%s738_s27 + $0x120] sm:$0xff] %v443_v8  ;;  %492 = vst [vmem:[%s738_s27 + $0x128] sm:$0xff] %v444_v11  ;;  %v339_v22 = vmul.f32 %v710_v6, %v279_v14  ;;  %v340_v23 = vmul.f32 %v712_v7, %v280_v15  ;;  %v341_v24 = vmul.f32 %v710_v6, %v281_v16 }
  0x3e   : > { %493 = vst [vmem:[%s738_s27 + $0x130] sm:$0xff] %v445_v12  ;;  %494 = vst [vmem:[%s738_s27 + $0x138] sm:$0xff] %v446_v13  ;;  %v342_v25 = vmul.f32 %v712_v7, %v282_v17  ;;  %v343_v26 = vmul.f32 %v710_v6, %v283_v18  ;;  %v344_v27 = vmul.f32 %v712_v7, %v284_v19 }
  0x3f   : > { %v345_v28 = vmul.f32 %v710_v6, %v285_v20  ;;  %v346_v29 = vmul.f32 %v712_v7, %v286_v21  ;;  %v399_v30 = vadd.f32 %v715_v9, %v339_v22  ;;  %v400_v31 = vadd.f32 %v717_v10, %v340_v23 }
  0x40   : > { %v401_v32 = vadd.f32 %v715_v9, %v341_v24  ;;  %v402_v33 = vadd.f32 %v717_v10, %v342_v25  ;;  %v403_v34 = vadd.f32 %v715_v9, %v343_v26  ;;  %v404_v35 = vadd.f32 %v717_v10, %v344_v27 }
  0x41   : > { %v405_v6 = vadd.f32 %v715_v9, %v345_v28  ;;  %v406_v7 = vadd.f32 %v717_v10, %v346_v29  ;;  %v447_v36 = vmax.f32 %v399_v30, 0.0  ;;  %v448_v37 = vmax.f32 %v400_v31, 0.0 }
  0x42   : > { %v449_v38 = vmax.f32 %v401_v32, 0.0  ;;  %v450_v39 = vmax.f32 %v402_v33, 0.0  ;;  %v451_v40 = vmax.f32 %v403_v34, 0.0  ;;  %v452_v41 = vmax.f32 %v404_v35, 0.0 }
  0x43   : > { %v453_v42 = vmax.f32 %v405_v6, 0.0  ;;  %v454_v43 = vmax.f32 %v406_v7, 0.0  ;;  %495 = vst [vmem:[%s738_s27 + $0x140] sm:$0xff] %v447_v36  ;;  %496 = vst [vmem:[%s738_s27 + $0x148] sm:$0xff] %v448_v37 }
  0x44   : > { %497 = vst [vmem:[%s738_s27 + $0x150] sm:$0xff] %v449_v38  ;;  %498 = vst [vmem:[%s738_s27 + $0x158] sm:$0xff] %v450_v39 }
  0x45   : > { %499 = vst [vmem:[%s738_s27 + $0x160] sm:$0xff] %v451_v40  ;;  %500 = vst [vmem:[%s738_s27 + $0x168] sm:$0xff] %v452_v41 }
  0x46   : > { %501 = vst [vmem:[%s738_s27 + $0x170] sm:$0xff] %v453_v42  ;;  %502 = vst [vmem:[%s738_s27 + $0x178] sm:$0xff] %v454_v43 }
  0x47 PF: > { %s13_s14 = sadd.s32 1, %s656_s14   ;;  %s905_s12 = smov %s652_s13 }
  0x48   : > { %p10_p5 = scmp.ge.s32.totalorder %s13_s14, 4   ;;  %s906_s13 = smov %s908_s15 }
  0x4a   :  { %12 = sbr.rel (!%p10_p5) target bundleno = 2 (0x2), region = 62 }

// kernel: conv_bn_relu.2
= control target key start
LH: loop header
LB: loop body
LE: loop exit
PB: predicated region body
PF: predicated region fallthrough
CT: control target
= control target key end

     0   :  { %s3833_s15 = smov 0   ;;  %s3835_s16 = smov 0   ;;  %s5009_s0 = inlined_call_operand.vmem [shape: bf16[2,14,18,128], index: 0, kind: input, shape index: {}]   ;;  %s5010_s1 = inlined_call_operand.vmem [shape: bf16[1152,256], index: 1, kind: input, shape index: {}]   ;;  %s5011_s2 = inlined_call_operand.vmem [shape: f32[1,12,16,1], index: 2, kind: input, shape index: {}]   ;;  %s5012_s3 = inlined_call_operand.vmem [shape: bf16[2,12,16,256], index: 3, kind: output, shape index: {0}]   ;;  %s5013_s4 = inlined_call_operand.vmem [shape: f32[2,1,2,256], index: 4, kind: output, shape index: {1}]  }
   0x1   :  { %s3837_s17 = smov 0  }
   0x2 LB: > { %s27_s18 = sadd.s32 1, %s3801_s16  ;;  %p3057_p0 = scmp.ge.s32.totalorder %s3805_s17, 1  ;;  %s3805_s17 = sphi %s3837_s17, %s15_s17   ;;  %s3801_s16 = sphi %s3835_s16, %s5081_s16   ;;  %s3797_s15 = sphi %s3833_s15, %s5080_s15  }
   0x3   : > { %p29_p1 = scmp.ge.s32.totalorder %s27_s18, 2  ;;  %p191_p2 = scmp.lt.s32.totalorder %s3805_s17, 3 }
   0x5   : > { %s5083_s18 = smov (%p29_p1, %s27_s18), 0  ;;  %p192_p3 = pnand %p3057_p0, %p191_p2 }
   0x7   : > { %195 = sbr.rel (%p192_p3) target bundleno = 561 (0x231), region = 32 }
   0xe   : > { %v3539_v0 = vld [vmem:[%s5010_s1 + $0x4] ss:$8 sps:$4 sm:$0xff]   ;;  %v3543_v2 = vld [vmem:[%s5010_s1] ss:$8 sps:$4 sm:$0xff]   ;;  %v3545_v4 = vld [vmem:[%s5010_s1 + $0x14] ss:$8 sps:$4 sm:$0xff]  }
   0xf   : > { %v3541_v1 = vld [vmem:[%s5010_s1 + $0x204] ss:$8 sps:$4 sm:$0xff]   ;;  %1543 = vmatprep.subr.bf16.mxu1 %v3539_v0  ;;  %v3544_v3 = vld [vmem:[%s5010_s1 + $0x200] ss:$8 sps:$4 sm:$0xff]   ;;  %v3547_v5 = vld [vmem:[%s5010_s1 + $0x214] ss:$8 sps:$4 sm:$0xff]  }
  0x10   : > { %1849 = vmatprep.subr.bf16.mxu0 %v3541_v1  ;;  %1544 = vmatpush1.bf16.msra.mxu1 %v3543_v2  ;;  %v3549_v6 = vld [vmem:[%s5010_s1 + $0x10] ss:$8 sps:$4 sm:$0xff]   ;;  %v3551_v8 = vld [vmem:[%s5010_s1 + $0x24] ss:$8 sps:$4 sm:$0xff]   ;;  %v3555_v10 = vld [vmem:[%s5010_s1 + $0x20] ss:$8 sps:$4 sm:$0xff]  }
  0x11   : > { %1850 = vmatpush1.bf16.msra.mxu0 %v3544_v3  ;;  %1545 = vmatprep.subr.bf16.mxu1 %v3545_v4  ;;  %v3550_v7 = vld [vmem:[%s5010_s1 + $0x210] ss:$8 sps:$4 sm:$0xff]   ;;  %v3553_v9 = vld [vmem:[%s5010_s1 + $0x224] ss:$8 sps:$4 sm:$0xff]   ;;  %v3556_v11 = vld [vmem:[%s5010_s1 + $0x220] ss:$8 sps:$4 sm:$0xff]  }
  0x12   : > { %1851 = vmatprep.subr.bf16.mxu0 %v3547_v5  ;;  %v3557_v12 = vld [vmem:[%s5010_s1 + $0x34] ss:$8 sps:$4 sm:$0xff]   ;;  %v3561_v14 = vld [vmem:[%s5010_s1 + $0x30] ss:$8 sps:$4 sm:$0xff]   ;;  %v3563_v16 = vld [vmem:[%s5010_s1 + $0x44] ss:$8 sps:$4 sm:$0xff]  }
  0x13   : > { %v3559_v13 = vld [vmem:[%s5010_s1 + $0x234] ss:$8 sps:$4 sm:$0xff]   ;;  %v3562_v15 = vld [vmem:[%s5010_s1 + $0x230] ss:$8 sps:$4 sm:$0xff]   ;;  %v3565_v17 = vld [vmem:[%s5010_s1 + $0x244] ss:$8 sps:$4 sm:$0xff]  }
  0x14   : > { %1546 = vmatpush1.bf16.msra.mxu1 %v3549_v6  ;;  %v3567_v18 = vld [vmem:[%s5010_s1 + $0x40] ss:$8 sps:$4 sm:$0xff]   ;;  %v3569_v20 = vld [vmem:[%s5010_s1 + $0x54] ss:$8 sps:$4 sm:$0xff]   ;;  %v3573_v22 = vld [vmem:[%s5010_s1 + $0x50] ss:$8 sps:$4 sm:$0xff]  }
  0x15   : > { %1852 = vmatpush1.bf16.msra.mxu0 %v3550_v7  ;;  %1547 = vmatprep.subr.bf16.mxu1 %v3551_v8  ;;  %v3568_v19 = vld [vmem:[%s5010_s1 + $0x240] ss:$8 sps:$4 sm:$0xff]   ;;  %v3571_v21 = vld [vmem:[%s5010_s1 + $0x254] ss:$8 sps:$4 sm:$0xff]   ;;  %v3574_v23 = vld [vmem:[%s5010_s1 + $0x250] ss:$8 sps:$4 sm:$0xff]  }
  0x16   : > { %1853 = vmatprep.subr.bf16.mxu0 %v3553_v9  ;;  %v3575_v24 = vld [vmem:[%s5010_s1 + $0x64] ss:$8 sps:$4 sm:$0xff]   ;;  %v3579_v26 = vld [vmem:[%s5010_s1 + $0x60] ss:$8 sps:$4 sm:$0xff]   ;;  %v3581_v28 = vld [vmem:[%s5010_s1 + $0x74] ss:$8 sps:$4 sm:$0xff]  }
  0x17   : > { %v3577_v25 = vld [vmem:[%s5010_s1 + $0x264] ss:$8 sps:$4 sm:$0xff]   ;;  %v3580_v27 = vld [vmem:[%s5010_s1 + $0x260] ss:$8 sps:$4 sm:$0xff]   ;;  %v3583_v29 = vld [vmem:[%s5010_s1 + $0x274] ss:$8 sps:$4 sm:$0xff]  }
  0x18   : > { %1548 = vmatpush1.bf16.msra.mxu1 %v3555_v10  ;;  %v3585_v30 = vld [vmem:[%s5010_s1 + $0x70] ss:$8 sps:$4 sm:$0xff]   ;;  %v3587_v32 = vld [vmem:[%s5010_s1 + $0x84] ss:$8 sps:$4 sm:$0xff]   ;;  %p236_p4 = scmp.lt.s32.totalorder %s3797_s15, 1  ;;  %vm578_vm1 = vcmask 1046528  }
  0x19   : > { %1854 = vmatpush1.bf16.msra.mxu0 %v3556_v11  ;;  %1549 = vmatprep.subr.bf16.mxu1 %v3557_v12  ;;  %v3586_v31 = vld [vmem:[%s5010_s1 + $0x270] ss:$8 sps:$4 sm:$0xff]   ;;  %v3589_v33 = vld [vmem:[%s5010_s1 + $0x284] ss:$8 sps:$4 sm:$0xff]   ;;  %v3591_v34 = vld [vmem:[%s5010_s1 + $0x80] ss:$8 sps:$4 sm:$0xff]  }
  0x1a   : > { %1855 = vmatprep.subr.bf16.mxu0 %v3559_v13  ;;  %v3592_v35 = vld [vmem:[%s5010_s1 + $0x280] ss:$8 sps:$4 sm:$0xff]   ;;  %v3593_v36 = vld [vmem:[%s5010_s1 + $0x94] ss:$8 sps:$4 sm:$0xff]   ;;  %s5085_s15 = smov (!%p236_p4, %s3797_s15), 1  ;;  %vm2880_vm2 = vcmask 1040384  }
  0x1b   : > { %v3595_v37 = vld [vmem:[%s5010_s1 + $0x294] ss:$8 sps:$4 sm:$0xff]   ;;  %v3597_v38 = vld [vmem:[%s5010_s1 + $0x90] ss:$8 sps:$4 sm:$0xff]   ;;  %v3599_v40 = vld [vmem:[%s5010_s1 + $0xa4] ss:$8 sps:$4 sm:$0xff]  }
  0x1c   : > { %1550 = vmatpush1.bf16.msra.mxu1 %v3561_v14  ;;  %v3598_v39 = vld [vmem:[%s5010_s1 + $0x290] ss:$8 sps:$4 sm:$0xff]   ;;  %s3510_s9 = smul.u32 168, %s5085_s15  ;;  %v3601_v41 = vld [vmem:[%s5010_s1 + $0x2a4] ss:$8 sps:$4 sm:$0xff]   ;;  %s3261_s21 = sshll.u32 %s5085_s15, 2 }
  0x1d   : > { %1856 = vmatpush1.bf16.msra.mxu0 %v3562_v15  ;;  %1551 = vmatprep.subr.bf16.mxu1 %v3563_v16  ;;  %v3603_v42 = vld [vmem:[%s5010_s1 + $0xa0] ss:$8 sps:$4 sm:$0xff]   ;;  %v3605_v44 = vld [vmem:[%s5010_s1 + $0xb4] ss:$8 sps:$4 sm:$0xff]   ;;  %vm421_vm0 = vsmask.f32 7424  ;;  %s265_s25 = scalar_lea.vmem %s5013_s4, %s3261_s21 }
  0x1e   : > { %1857 = vmatprep.subr.bf16.mxu0 %v3565_v17  ;;  %v3604_v43 = vld [vmem:[%s5010_s1 + $0x2a0] ss:$8 sps:$4 sm:$0xff]   ;;  %s3996_s24 = scalar_lea.vmem %s5009_s0, %s3510_s9  ;;  %v3607_v45 = vld [vmem:[%s5010_s1 + $0x2b4] ss:$8 sps:$4 sm:$0xff]   ;;  %v3609_v46 = vld [vmem:[%s5010_s1 + $0xb0] ss:$8 sps:$4 sm:$0xff]  }
  0x1f   : > { %v3610_v47 = vld [vmem:[%s5010_s1 + $0x2b0] ss:$8 sps:$4 sm:$0xff]   ;;  %v3611_v48 = vld [vmem:[%s5010_s1 + $0xc4] ss:$8 sps:$4 sm:$0xff]   ;;  %v3615_v58 = vld [vmem:[%s5010_s1 + $0xc0] ss:$8 sps:$4 sm:$0xff]  }
  0x20   : > { %1552 = vmatpush1.bf16.msra.mxu1 %v3567_v18  ;;  %v3613_v49 = vld [vmem:[%s5010_s1 + $0x2c4] ss:$8 sps:$4 sm:$0xff]   ;;  %v3636_v51 = vld [vmem:[%s3996_s24 + $0x8] ss:$0 sps:$4 sm:$0x11]   ;;  %v4066_v17 = vld [vmem:[%s3996_s24 + $0x18] sm:$0xff]  }
  0x21   : > { %1858 = vmatpush1.bf16.msra.mxu0 %v3568_v19  ;;  %1553 = vmatprep.subr.bf16.mxu1 %v3569_v20  ;;  %v4014_v50 = vld [vmem:[%s3996_s24] sm:$0xff]   ;;  %v4018_v52 = vld [vmem:[%s3996_s24 + $0xc] sm:$0xff]   ;;  %v430_v55 = vshll.u32 %v3636_v51, 16  ;;  %v3638_v56 = vld [vmem:[%s3996_s24 + $0x14] ss:$0 sps:$4 sm:$0x11]  }
  0x22   : > { %1859 = vmatprep.subr.bf16.mxu0 %v3571_v21  ;;  %v423_v53 = vshrl.u32 %v4014_v50, 16  ;;  %v425_v54 = vshll.u32 %v4014_v50, 16  ;;  %v582_v57 = vrot.slane %v4018_v52, 1  ;;  %v580_v60 = vrot.slane %v3636_v51, 1  ;;  %v3616_v61 = vld [vmem:[%s5010_s1 + $0x2c0] ss:$8 sps:$4 sm:$0xff]  }
  0x23   : > { %v3617_v62 = vld [vmem:[%s5010_s1 + $0xd4] ss:$8 sps:$4 sm:$0xff]   ;;  %v432_v63 = vrot.slane %v430_v55, 1  ;;  %v583_v0 = vrot.slane %v3638_v56, 1  ;;  %v579_v3 = vrot.slane %v4014_v50, 1  ;;  %v437_v10 = vshll.u32 %v4018_v52, 16 }
  0x24   : > { %1554 = vmatpush1.bf16.msra.mxu1 %v3573_v22  ;;  %v427_v59 = vrot.slane %v425_v54, 1  ;;  %v3619_v1 = vld [vmem:[%s5010_s1 + $0x2d4] ss:$8 sps:$4 sm:$0xff]   ;;  %v3621_v4 = vld [vmem:[%s5010_s1 + $0xd0] ss:$8 sps:$4 sm:$0xff]   ;;  %v435_v14 = vshrl.u32 %v4018_v52, 16 }
  0x25   : > { %1860 = vmatpush1.bf16.msra.mxu0 %v3574_v23  ;;  %1555 = vmatprep.subr.bf16.mxu1 %v3575_v24  ;;  %v4041_v5 = vsel %vm578_vm1, %v582_v57, %v583_v0  ;;  %v3622_v6 = vld [vmem:[%s5010_s1 + $0x2d0] ss:$8 sps:$4 sm:$0xff]   ;;  %v3623_v7 = vld [vmem:[%s5010_s1 + $0xe4] ss:$8 sps:$4 sm:$0xff]   ;;  %v4052_v9 = vsel %vm578_vm1, %v579_v3, %v580_v60  ;;  %v3627_v12 = vld [vmem:[%s5010_s1 + $0xe0] ss:$8 sps:$4 sm:$0xff]  }
  0x26   : > { %1861 = vmatprep.subr.bf16.mxu0 %v3577_v25  ;;  %v428_v2 = vor.u32 %v427_v59, %v423_v53  ;;  %1881 = vmatprep.mubr.bf16.mxu0 %v4041_v5  ;;  %v3625_v11 = vld [vmem:[%s5010_s1 + $0x2e4] ss:$8 sps:$4 sm:$0xff]   ;;  %v3628_v13 = vld [vmem:[%s5010_s1 + $0x2e0] ss:$8 sps:$4 sm:$0xff]   ;;  %v439_v15 = vrot.slane %v437_v10, 1  ;;  %v442_v16 = vshll.u32 %v3638_v56, 16 }
  0x27   : > { %v3629_v18 = vld [vmem:[%s5010_s1 + $0xf4] ss:$8 sps:$4 sm:$0xff]   ;;  %v3633_v20 = vld [vmem:[%s5010_s1 + $0xf0] ss:$8 sps:$4 sm:$0xff]   ;;  %v449_v25 = vshll.u32 %v4066_v17, 16 }
  0x28   : > { %1556 = vmatpush1.bf16.msra.mxu1 %v3579_v26  ;;  %v433_v8 = vsel %vm421_vm0, %v428_v2, %v432_v63  ;;  %v3631_v19 = vld [vmem:[%s5010_s1 + $0x2f4] ss:$8 sps:$4 sm:$0xff]   ;;  %v3649_v21 = vld [vmem:[%s3996_s24 + $0x20] ss:$0 sps:$4 sm:$0x11]   ;;  %v440_v23 = vor.u32 %v439_v15, %v435_v14  ;;  %v444_v24 = vrot.slane %v442_v16, 1 }
  0x29   : > { %1862 = vmatpush1.bf16.msra.mxu0 %v3580_v27  ;;  %1557 = vmatprep.subr.bf16.mxu1 %v3581_v28  ;;  %v3634_v22 = vld [vmem:[%s5010_s1 + $0x2f0] ss:$8 sps:$4 sm:$0xff]   ;;  %v3641_v26 = vld [vmem:[%s5010_s1 + $0x104] ss:$8 sps:$4 sm:$0xff]   ;;  %v3639_v28 = vld [vmem:[%s5010_s1 + $0x100] ss:$8 sps:$4 sm:$0xff]  }
  0x2a   : > { %1863 = vmatprep.subr.bf16.mxu0 %v3583_v29  ;;  %1575 = vmatprep.mubr.bf16.mxu1 %v433_v8  ;;  %v4088_v27 = vld [vmem:[%s5010_s1 + $0x304] ss:$8 sps:$4 sm:$0xff]   ;;  %v4096_v29 = vld [vmem:[%s5010_s1 + $0x300] ss:$8 sps:$4 sm:$0xff]   ;;  %v4148_v56 = vld [vmem:[%s3996_s24 + $0x30] sm:$0xff]   ;;  %v5014_v14 = vmov 0  }
  0x2b   : > { %v4153_v57 = vld [vmem:[%s5010_s1 + $0x320] ss:$8 sps:$4 sm:$0xff]   ;;  %v3661_v60 = vld [vmem:[%s5010_s1 + $0x130] ss:$8 sps:$4 sm:$0xff]   ;;  %v473_v2 = vshll.u32 %v4148_v56, 16  ;;  %v591_v3 = vrot.slane %v4148_v56, 1  ;;  %3537 = vset.pattern.permute.xlu0 %v5014_v14  ;;  %3538 = vset.pattern.permute.xlu1 %v5014_v14 }
  0x2c   : > { %1558 = vmatpush1.bf16.msra.mxu1 %v3585_v30  ;;  %v585_v30 = vrot.slane %v4066_v17, 1  ;;  %v3669_v8 = vld [vmem:[%s5010_s1 + $0x140] ss:$8 sps:$4 sm:$0xff]   ;;  %v471_v10 = vshrl.u32 %v4148_v56, 16  ;;  %v4448_v14 = vld [vmem:[%s5010_s1 + $0x3d0] ss:$8 sps:$4 sm:$0xff]  }
  0x2d   : > { %1864 = vmatpush1.bf16.msra.mxu0 %v3586_v31  ;;  %1559 = vmatprep.subr.bf16.mxu1 %v3587_v32  ;;  %v586_v31 = vrot.slane %v3649_v21, 1  ;;  %v447_v32 = vshrl.u32 %v4066_v17, 16  ;;  %v475_v16 = vrot.slane %v473_v2, 1  ;;  %5041 = vst [vmem:[#allocation8_spill] sm:$0xff] %v4448_v14 }
  0x2e   : > { %1865 = vmatprep.subr.bf16.mxu0 %v3589_v33  ;;  %v445_v33 = vsel %vm421_vm0, %v440_v23, %v444_v24  ;;  %v3675_v24 = vld [vmem:[%s5010_s1 + $0x150] ss:$8 sps:$4 sm:$0xff]  }
  0x30   : > { %1560 = vmatpush1.bf16.msra.mxu1 %v3591_v34  ;;  %v451_v34 = vrot.slane %v449_v25, 1 }
  0x31   : > { %1866 = vmatpush1.bf16.msra.mxu0 %v3592_v35  ;;  %1561 = vmatprep.subr.bf16.mxu1 %v3593_v36  ;;  %v454_v35 = vshll.u32 %v3649_v21, 16  ;;  %v4102_v36 = vld [vmem:[%s3996_s24 + $0x24] sm:$0xff]   ;;  %v4221_v21 = vld [vmem:[%s5010_s1 + $0x354] ss:$8 sps:$4 sm:$0xff]  }
  0x32   : > { %1867 = vmatprep.subr.bf16.mxu0 %v3595_v37  ;;  %v3647_v37 = vld [vmem:[%s5010_s1 + $0x114] ss:$8 sps:$4 sm:$0xff]   ;;  %v459_v53 = vshrl.u32 %v4102_v36, 16 }
  0x34   : > { %1562 = vmatpush1.bf16.msra.mxu1 %v3597_v38  ;;  %v4111_v38 = vld [vmem:[%s5010_s1 + $0x314] ss:$8 sps:$4 sm:$0xff]  }
  0x35   : > { %1868 = vmatpush1.bf16.msra.mxu0 %v3598_v39  ;;  %1563 = vmatprep.subr.bf16.mxu1 %v3599_v40  ;;  %v3660_v39 = vld [vmem:[%s3996_s24 + $0x2c] ss:$0 sps:$4 sm:$0x11]   ;;  %v3645_v40 = vld [vmem:[%s5010_s1 + $0x110] ss:$8 sps:$4 sm:$0xff]  }
  0x36   : > { %1869 = vmatprep.subr.bf16.mxu0 %v3601_v41  ;;  %v4119_v41 = vsel %vm578_vm1, %v585_v30, %v586_v31  ;;  %v466_v55 = vshll.u32 %v3660_v39, 16  ;;  %v4236_v30 = vld [vmem:[%s5010_s1 + $0x350] ss:$8 sps:$4 sm:$0xff]   ;;  %v3685_v31 = vld [vmem:[%s5010_s1 + $0x164] ss:$8 sps:$4 sm:$0xff]  }
  0x38   : > { %1564 = vmatpush1.bf16.msra.mxu1 %v3603_v42  ;;  %v4124_v42 = vld [vmem:[%s5010_s1 + $0x310] ss:$8 sps:$4 sm:$0xff]   ;;  %v468_v0 = vrot.slane %v466_v55, 1 }
  0x39   : > { %1870 = vmatpush1.bf16.msra.mxu0 %v3604_v43  ;;  %1565 = vmatprep.subr.bf16.mxu1 %v3605_v44  ;;  %v452_v43 = vor.u32 %v451_v34, %v447_v32  ;;  %v456_v44 = vrot.slane %v454_v35, 1  ;;  %v4245_v32 = vld [vmem:[%s5010_s1 + $0x364] ss:$8 sps:$4 sm:$0xff]   ;;  %v3683_v34 = vld [vmem:[%s5010_s1 + $0x160] ss:$8 sps:$4 sm:$0xff]  }
  0x3a   : > { %1871 = vmatprep.subr.bf16.mxu0 %v3607_v45  ;;  %v3655_v45 = vld [vmem:[%s5010_s1 + $0x124] ss:$8 sps:$4 sm:$0xff]  }
  0x3b   : > { %v4143_v51 = vsel %vm421_vm0, %v452_v43, %v456_v44  ;;  %v4251_v35 = vld [vmem:[%s3996_s24 + $0x48] sm:$0xff]  }
  0x3c   : > { %1566 = vmatpush1.bf16.msra.mxu1 %v3609_v46  ;;  %v461_v46 = vshll.u32 %v4102_v36, 16  ;;  %v4260_v43 = vld [vmem:[%s5010_s1 + $0x360] ss:$8 sps:$4 sm:$0xff]   ;;  %v597_v55 = vrot.slane %v4251_v35, 1  ;;  %v495_v2 = vshrl.u32 %v4251_v35, 16 }
  0x3d   : > { %1872 = vmatpush1.bf16.msra.mxu0 %v3610_v47  ;;  %1567 = vmatprep.subr.bf16.mxu1 %v3611_v48  ;;  %v4134_v47 = vld [vmem:[%s5010_s1 + $0x324] ss:$8 sps:$4 sm:$0xff]   ;;  %v588_v48 = vrot.slane %v4102_v36, 1 }
  0x3e   : > { %1873 = vmatprep.subr.bf16.mxu0 %v3613_v49  ;;  %v589_v49 = vrot.slane %v3660_v39, 1  ;;  %v463_v54 = vrot.slane %v461_v46, 1  ;;  %v3693_v46 = vld [vmem:[%s5010_s1 + $0x174] ss:$8 sps:$4 sm:$0xff]  }
  0x40   : > { %1568 = vmatpush1.bf16.msra.mxu1 %v3615_v58  ;;  %v3668_v58 = vld [vmem:[%s3996_s24 + $0x38] ss:$0 sps:$4 sm:$0x11]   ;;  %v4158_v59 = vsel %vm578_vm1, %v588_v48, %v589_v49  ;;  %v464_v63 = vor.u32 %v463_v54, %v459_v53  ;;  %v4274_v48 = vld [vmem:[%s5010_s1 + $0x374] ss:$8 sps:$4 sm:$0xff]  }
  0x41   : > { %1874 = vmatpush1.bf16.msra.mxu0 %v3616_v61  ;;  %1569 = vmatprep.subr.bf16.mxu1 %v3617_v62  ;;  %v3663_v61 = vld [vmem:[%s5010_s1 + $0x134] ss:$8 sps:$4 sm:$0xff]   ;;  %v3691_v53 = vld [vmem:[%s5010_s1 + $0x170] ss:$8 sps:$4 sm:$0xff]  }
  0x42   : > { %1875 = vmatprep.subr.bf16.mxu0 %v3619_v1  ;;  %v4169_v62 = vld [vmem:[%s5010_s1 + $0x334] ss:$8 sps:$4 sm:$0xff]   ;;  %v4177_v1 = vld [vmem:[%s5010_s1 + $0x330] ss:$8 sps:$4 sm:$0xff]   ;;  %v4207_v15 = vsel %vm421_vm0, %v464_v63, %v468_v0  ;;  %v3701_v63 = vld [vmem:[%s5010_s1 + $0x184] ss:$8 sps:$4 sm:$0xff]  }
  0x43   : > { %v4301_v0 = vld [vmem:[%s5010_s1 + $0x384] ss:$8 sps:$4 sm:$0xff]  }
  0x44   : > { %1570 = vmatpush1.bf16.msra.mxu1 %v3621_v4  ;;  %v592_v4 = vrot.slane %v3668_v58, 1 }
  0x45   : > { %1876 = vmatpush1.bf16.msra.mxu0 %v3622_v6  ;;  %1571 = vmatprep.subr.bf16.mxu1 %v3623_v7  ;;  %v3671_v6 = vld [vmem:[%s5010_s1 + $0x144] ss:$8 sps:$4 sm:$0xff]  }
  0x46   : > { %1877 = vmatprep.subr.bf16.mxu0 %v3625_v11  ;;  %v4190_v7 = vld [vmem:[%s5010_s1 + $0x344] ss:$8 sps:$4 sm:$0xff]   ;;  %v478_v11 = vshll.u32 %v3668_v58, 16 }
  0x48   : > { %1572 = vmatpush1.bf16.msra.mxu1 %v3627_v12  ;;  %v4199_v12 = vld [vmem:[%s5010_s1 + $0x340] ss:$8 sps:$4 sm:$0xff]   ;;  %v480_v23 = vrot.slane %v478_v11, 1 }
  0x49   : > { %1878 = vmatpush1.bf16.msra.mxu0 %v3628_v13  ;;  %1573 = vmatprep.subr.bf16.mxu1 %v3629_v18  ;;  %v4202_v13 = vld [vmem:[%s3996_s24 + $0x3c] sm:$0xff]   ;;  %v4211_v18 = vsel %vm578_vm1, %v591_v3, %v592_v4 }
  0x4a   : > { %1879 = vmatprep.subr.bf16.mxu0 %v3631_v19  ;;  %v3679_v19 = vld [vmem:[%s3996_s24 + $0x44] ss:$0 sps:$4 sm:$0x11]   ;;  %v594_v25 = vrot.slane %v4202_v13, 1  ;;  %v483_v39 = vshrl.u32 %v4202_v13, 16 }
  0x4b   : > { %v3698_v3 = vld [vmem:[%s3996_s24 + $0x5c] ss:$0 sps:$4 sm:$0x11]   ;;  %v4314_v11 = vld [vmem:[%s5010_s1 + $0x380] ss:$8 sps:$4 sm:$0xff]  }
  0x4c   : > { %1574 = vmatpush1.bf16.msra.mxu1 %v3633_v20  ;;  %v3677_v20 = vld [vmem:[%s5010_s1 + $0x154] ss:$8 sps:$4 sm:$0xff]  }
  0x4d   : > { %1880 = vmatpush1.bf16.msra.mxu0 %v3634_v22  ;;  %1696 = vmatprep.subr.bf16.mxu1 %v3641_v26  ;;  %v476_v22 = vor.u32 %v475_v16, %v471_v10  ;;  %v485_v26 = vshll.u32 %v4202_v13, 16  ;;  %v3699_v10 = vld [vmem:[%s5010_s1 + $0x180] ss:$8 sps:$4 sm:$0xff]  }
  0x4e   : > { %2002 = vmatprep.subr.bf16.mxu0 %v4088_v27 }
  0x4f   : > { %1576 = vmatmul.mubr.bf16.vlgmr.msra.gmra.mrb[0].mxu1 %v4014_v50  ;;  %v3653_v50 = vld [vmem:[%s5010_s1 + $0x120] ss:$8 sps:$4 sm:$0xff]  }
  0x50   : > { %1882 = vmatmul.mubr.bf16.vlgmr.msra.gmra.mrb[0].mxu0 %v445_v33  ;;  %1697 = vmatpush1.bf16.msra.mxu1 %v3639_v28  ;;  %v595_v28 = vrot.slane %v3679_v19, 1 }
  0x51   : > { %2003 = vmatpush1.bf16.msra.mxu0 %v4096_v29  ;;  %1698 = vmatprep.subr.bf16.mxu1 %v3647_v37  ;;  %v4254_v37 = vsel %vm421_vm0, %v476_v22, %v480_v23 }
  0x52   : > { %1585 = vmatprep.mubr.bf16.mxu1 %v445_v33  ;;  %1891 = vmatprep.mubr.bf16.mxu0 %v4119_v41  ;;  %v490_v33 = vshll.u32 %v3679_v19, 16  ;;  %v4263_v44 = vsel %vm578_vm1, %v594_v25, %v595_v28  ;;  %v3707_v19 = vld [vmem:[%s5010_s1 + $0x194] ss:$8 sps:$4 sm:$0xff]  }
  0x53   : > { %2004 = vmatprep.subr.bf16.mxu0 %v4111_v38 }
  0x54   : > { %1699 = vmatpush1.bf16.msra.mxu1 %v3645_v40  ;;  %v487_v40 = vrot.slane %v485_v26, 1  ;;  %v492_v49 = vrot.slane %v490_v33, 1  ;;  %v601_v26 = vrot.slane %v3698_v3, 1  ;;  %v4343_v33 = vld [vmem:[%s5010_s1 + $0x390] ss:$8 sps:$4 sm:$0xff]  }
  0x55   : > { %2005 = vmatpush1.bf16.msra.mxu0 %v4124_v42  ;;  %1700 = vmatprep.subr.bf16.mxu1 %v3655_v45  ;;  %v3690_v45 = vld [vmem:[%s3996_s24 + $0x50] ss:$0 sps:$4 sm:$0x11]  }
  0x56   : > { %2006 = vmatprep.subr.bf16.mxu0 %v4134_v47  ;;  %v488_v54 = vor.u32 %v487_v40, %v483_v39  ;;  %v598_v58 = vrot.slane %v3690_v45, 1  ;;  %v3709_v39 = vld [vmem:[%s3996_s24 + $0x68] ss:$0 sps:$4 sm:$0x11]   ;;  %v3715_v40 = vld [vmem:[%s5010_s1 + $0x1a4] ss:$8 sps:$4 sm:$0xff]  }
  0x57   : > { %1586 = vmatmul.mubr.bf16.gmra.mrb[4].mxu1 %v4018_v52 }
  0x58   : > { %1892 = vmatmul.mubr.bf16.gmra.mrb[4].mxu0 %v4143_v51  ;;  %1701 = vmatpush1.bf16.msra.mxu1 %v3653_v50  ;;  %v497_v50 = vshll.u32 %v4251_v35, 16  ;;  %v4306_v4 = vsel %vm421_vm0, %v488_v54, %v492_v49  ;;  %v4317_v16 = vsel %vm578_vm1, %v597_v55, %v598_v58  ;;  %v4356_v49 = vld [vmem:[%s3996_s24 + $0x60] sm:$0xff]   ;;  %v3723_v58 = vld [vmem:[%s5010_s1 + $0x1b4] ss:$8 sps:$4 sm:$0xff]  }
  0x59   : > { %1595 = vmatprep.mubr.bf16.mxu1 %v4143_v51  ;;  %1901 = vmatprep.mubr.bf16.mxu0 %v4158_v59  ;;  %5035 = vst [vmem:[#allocation2_spill] sm:$0xff] %v4317_v16  ;;  %v4367_v54 = vld [vmem:[%s5010_s1 + $0x3a0] ss:$8 sps:$4 sm:$0xff]  }
  0x5a   : > { %2007 = vmatpush1.bf16.msra.mxu0 %v4153_v57  ;;  %1702 = vmatprep.subr.bf16.mxu1 %v3663_v61  ;;  %v4292_v61 = vld [vmem:[%s3996_s24 + $0x54] sm:$0xff]  }
  0x5b   : > { %2008 = vmatprep.subr.bf16.mxu0 %v4169_v62  ;;  %v509_v22 = vshll.u32 %v4292_v61, 16  ;;  %v600_v25 = vrot.slane %v4292_v61, 1  ;;  %v507_v28 = vshrl.u32 %v4292_v61, 16 }
  0x5c   : > { %1703 = vmatpush1.bf16.msra.mxu1 %v3661_v60  ;;  %v4289_v60 = vld [vmem:[%s5010_s1 + $0x370] ss:$8 sps:$4 sm:$0xff]  }
  0x5d   : > { %1704 = vmatprep.subr.bf16.mxu1 %v3671_v6  ;;  %v499_v6 = vrot.slane %v497_v50, 1  ;;  %v4370_v55 = vsel %vm578_vm1, %v600_v25, %v601_v26  ;;  %v519_v25 = vshrl.u32 %v4356_v49, 16  ;;  %v526_v26 = vshll.u32 %v3709_v39, 16 }
  0x5e   : > { %2009 = vmatpush1.bf16.msra.mxu0 %v4177_v1  ;;  %5036 = vst [vmem:[#allocation3_spill] sm:$0xff] %v4370_v55 }
  0x5f   : > { %2010 = vmatprep.subr.bf16.mxu0 %v4190_v7  ;;  %1596 = vmatmul.mubr.bf16.gmra.mrb[8].mxu1 %v4066_v17  ;;  %v500_v23 = vor.u32 %v499_v6, %v495_v2  ;;  %v521_v6 = vshll.u32 %v4356_v49, 16 }
  0x60   : > { %1902 = vmatmul.mubr.bf16.gmra.mrb[8].mxu0 %v4207_v15  ;;  %1605 = vmatprep.mubr.bf16.mxu1 %v4207_v15 }
  0x61   : > { %1911 = vmatprep.mubr.bf16.mxu0 %v4211_v18  ;;  %1705 = vmatpush1.bf16.msra.mxu1 %v3669_v8  ;;  %v502_v8 = vshll.u32 %v3690_v45, 16  ;;  %v4353_v45 = vld [vmem:[%s5010_s1 + $0x3a4] ss:$8 sps:$4 sm:$0xff]  }
  0x62   : > { %2011 = vmatpush1.bf16.msra.mxu0 %v4199_v12  ;;  %1706 = vmatprep.subr.bf16.mxu1 %v3677_v20  ;;  %v4327_v20 = vld [vmem:[%s5010_s1 + $0x394] ss:$8 sps:$4 sm:$0xff]  }
  0x63   : > { %2012 = vmatprep.subr.bf16.mxu0 %v4221_v21 }
  0x65   : > { %1707 = vmatpush1.bf16.msra.mxu1 %v3675_v24  ;;  %v504_v24 = vrot.slane %v502_v8, 1 }
  0x66   : > { %2013 = vmatpush1.bf16.msra.mxu0 %v4236_v30  ;;  %1708 = vmatprep.subr.bf16.mxu1 %v3685_v31  ;;  %v3705_v31 = vld [vmem:[%s5010_s1 + $0x190] ss:$8 sps:$4 sm:$0xff]  }
  0x67   : > { %2014 = vmatprep.subr.bf16.mxu0 %v4245_v32  ;;  %1606 = vmatmul.mubr.bf16.gmra.mrb[12].mxu1 %v4102_v36  ;;  %v4359_v50 = vsel %vm421_vm0, %v500_v23, %v504_v24  ;;  %v3731_v23 = vld [vmem:[%s5010_s1 + $0x1c4] ss:$8 sps:$4 sm:$0xff]  }
  0x68   : > { %1912 = vmatmul.mubr.bf16.gmra.mrb[12].mxu0 %v4254_v37  ;;  %1615 = vmatprep.mubr.bf16.mxu1 %v4254_v37  ;;  %v4404_v24 = vld [vmem:[%s5010_s1 + $0x3c4] ss:$8 sps:$4 sm:$0xff]  }
  0x69   : > { %1921 = vmatprep.mubr.bf16.mxu0 %v4263_v44  ;;  %1709 = vmatpush1.bf16.msra.mxu1 %v3683_v34  ;;  %v514_v34 = vshll.u32 %v3698_v3, 16  ;;  %v603_v3 = vrot.slane %v4356_v49, 1  ;;  %5037 = vst [vmem:[#allocation4_spill] sm:$0xff] %v4404_v24 }
  0x6a   : > { %2015 = vmatpush1.bf16.msra.mxu0 %v4260_v43  ;;  %1710 = vmatprep.subr.bf16.mxu1 %v3693_v46  ;;  %v511_v46 = vrot.slane %v509_v22, 1  ;;  %v4394_v22 = vld [vmem:[%s5010_s1 + $0x3b0] ss:$8 sps:$4 sm:$0xff]  }
  0x6b   : > { %2016 = vmatprep.subr.bf16.mxu0 %v4274_v48  ;;  %v516_v2 = vrot.slane %v514_v34, 1  ;;  %v523_v34 = vrot.slane %v521_v6, 1  ;;  %v528_v6 = vrot.slane %v526_v26, 1  ;;  %v4457_v26 = vld [vmem:[%s5010_s1 + $0x3e4] ss:$8 sps:$4 sm:$0xff]  }
  0x6c   : > { %v512_v8 = vor.u32 %v511_v46, %v507_v28  ;;  %v4408_v28 = vld [vmem:[%s3996_s24 + $0x6c] sm:$0xff]   ;;  %5042 = vst [vmem:[#allocation9_spill] sm:$0xff] %v4457_v26 }
  0x6d   : > { %1711 = vmatpush1.bf16.msra.mxu1 %v3691_v53  ;;  %v3713_v53 = vld [vmem:[%s5010_s1 + $0x1a0] ss:$8 sps:$4 sm:$0xff]  }
  0x6e   : > { %2017 = vmatpush1.bf16.msra.mxu0 %v4289_v60  ;;  %1712 = vmatprep.subr.bf16.mxu1 %v3701_v63  ;;  %v4380_v63 = vld [vmem:[%s5010_s1 + $0x3b4] ss:$8 sps:$4 sm:$0xff]  }
  0x6f   : > { %2018 = vmatprep.subr.bf16.mxu0 %v4301_v0  ;;  %1616 = vmatmul.mubr.bf16.gmra.mrb[16].mxu1 %v4148_v56 }
  0x70   : > { %1922 = vmatmul.mubr.bf16.gmra.mrb[16].mxu0 %v4306_v4  ;;  %1625 = vmatprep.mubr.bf16.mxu1 %v4306_v4 }
  0x71   : > { %1931 = vmatprep.mubr.bf16.mxu0 %v4317_v16  ;;  %1713 = vmatpush1.bf16.msra.mxu1 %v3699_v10  ;;  %v604_v10 = vrot.slane %v3709_v39, 1  ;;  %v4424_v39 = vld [vmem:[%s5010_s1 + $0x3c0] ss:$8 sps:$4 sm:$0xff]  }
  0x72   : > { %2019 = vmatpush1.bf16.msra.mxu0 %v4314_v11  ;;  %1714 = vmatprep.subr.bf16.mxu1 %v3707_v19  ;;  %v3721_v19 = vld [vmem:[%s5010_s1 + $0x1b0] ss:$8 sps:$4 sm:$0xff]   ;;  %5039 = vst [vmem:[#allocation6_spill] sm:$0xff] %v4424_v39  ;;  %v3743_v16 = vld [vmem:[%s5010_s1 + $0x1e0] ss:$8 sps:$4 sm:$0xff]  }
  0x73   : > { %2020 = vmatprep.subr.bf16.mxu0 %v4327_v20  ;;  %v4415_v46 = vsel %vm578_vm1, %v603_v3, %v604_v10  ;;  %v524_v3 = vor.u32 %v523_v34, %v519_v25  ;;  %v533_v10 = vshll.u32 %v4408_v28, 16  ;;  %v3745_v25 = vld [vmem:[%s5010_s1 + $0x1e4] ss:$8 sps:$4 sm:$0xff]   ;;  %v531_v34 = vshrl.u32 %v4408_v28, 16 }
  0x74   : > { %5038 = vst [vmem:[#allocation5_spill] sm:$0xff] %v4415_v46 }
  0x75   : > { %1715 = vmatpush1.bf16.msra.mxu1 %v3705_v31  ;;  %v4411_v31 = vsel %vm421_vm0, %v512_v8, %v516_v2  ;;  %v4433_v2 = vld [vmem:[%s5010_s1 + $0x3d4] ss:$8 sps:$4 sm:$0xff]   ;;  %v606_v8 = vrot.slane %v4408_v28, 1 }
  0x76   : > { %2021 = vmatpush1.bf16.msra.mxu0 %v4343_v33  ;;  %1716 = vmatprep.subr.bf16.mxu1 %v3715_v40  ;;  %v3720_v40 = vld [vmem:[%s3996_s24 + $0x74] ss:$0 sps:$4 sm:$0x11]   ;;  %5040 = vst [vmem:[#allocation7_spill] sm:$0xff] %v4433_v2 }
  0x77   : > { %2022 = vmatprep.subr.bf16.mxu0 %v4353_v45  ;;  %1626 = vmatmul.mubr.bf16.gmra.mrb[20].mxu1 %v4202_v13 }
  0x78   : > { %1932 = vmatmul.mubr.bf16.gmra.mrb[20].mxu0 %v4359_v50  ;;  %1635 = vmatprep.mubr.bf16.mxu1 %v4359_v50 }
  0x79   : > { %1941 = vmatprep.mubr.bf16.mxu0 %v4370_v55  ;;  %1717 = vmatpush1.bf16.msra.mxu1 %v3713_v53  ;;  %v3729_v53 = vld [vmem:[%s5010_s1 + $0x1c0] ss:$8 sps:$4 sm:$0xff]   ;;  %v4464_v55 = vsel %vm421_vm0, %v524_v3, %v528_v6  ;;  %v3753_v3 = vld [vmem:[%s5010_s1 + $0x1f4] ss:$8 sps:$4 sm:$0xff]  }
  0x7a   : > { %2023 = vmatpush1.bf16.msra.mxu0 %v4367_v54  ;;  %1718 = vmatprep.subr.bf16.mxu1 %v3723_v58  ;;  %v3737_v58 = vld [vmem:[%s5010_s1 + $0x1d4] ss:$8 sps:$4 sm:$0xff]   ;;  %5043 = vst [vmem:[#allocation10_spill] sm:$0xff] %v4464_v55 }
  0x7b   : > { %2024 = vmatprep.subr.bf16.mxu0 %v4380_v63  ;;  %v4486_v6 = vld [vmem:[%s5010_s1 + $0x3f4] ss:$8 sps:$4 sm:$0xff]  }
  0x7d   : > { %1719 = vmatpush1.bf16.msra.mxu1 %v3721_v19  ;;  %v607_v19 = vrot.slane %v3720_v40, 1 }
  0x7e   : > { %2025 = vmatpush1.bf16.msra.mxu0 %v4394_v22  ;;  %1720 = vmatprep.subr.bf16.mxu1 %v3731_v23  ;;  %v3735_v23 = vld [vmem:[%s5010_s1 + $0x1d0] ss:$8 sps:$4 sm:$0xff]  }
  0x7f   : > { %2026 = vmatprep.subr.bf16.mxu0 %v4404_v24  ;;  %1636 = vmatmul.mubr.bf16.gmra.mrb[24].mxu1 %v4251_v35  ;;  %v3739_v24 = vld [vmem:[%s3996_s24 + $0x8c] ss:$0 sps:$4 sm:$0x11]  }
  0x80   : > { %1942 = vmatmul.mubr.bf16.gmra.mrb[24].mxu0 %v4411_v31  ;;  %1645 = vmatprep.mubr.bf16.mxu1 %v4411_v31 }
  0x81   : > { %1951 = vmatprep.mubr.bf16.mxu0 %v4415_v46  ;;  %1721 = vmatpush1.bf16.msra.mxu1 %v3729_v53  ;;  %v538_v53 = vshll.u32 %v3720_v40, 16  ;;  %v4461_v46 = vld [vmem:[%s3996_s24 + $0x78] sm:$0xff]   ;;  %v4477_v40 = vld [vmem:[%s5010_s1 + $0x3e0] ss:$8 sps:$4 sm:$0xff]  }
  0x82   : > { %2027 = vmatpush1.bf16.msra.mxu0 %v4424_v39  ;;  %1722 = vmatprep.subr.bf16.mxu1 %v3737_v58  ;;  %v535_v58 = vrot.slane %v533_v10, 1  ;;  %v3728_v39 = vld [vmem:[%s3996_s24 + $0x80] ss:$0 sps:$4 sm:$0x11]   ;;  %5045 = vst [vmem:[#allocation12_spill] sm:$0xff] %v4477_v40  ;;  %v609_v10 = vrot.slane %v4461_v46, 1 }
  0x83   : > { %2028 = vmatprep.subr.bf16.mxu0 %v4433_v2  ;;  %v4468_v2 = vsel %vm578_vm1, %v606_v8, %v607_v19  ;;  %v540_v8 = vrot.slane %v538_v53, 1  ;;  %v4501_v53 = vld [vmem:[%s5010_s1 + $0x3f0] ss:$8 sps:$4 sm:$0xff]  }
  0x84   : > { %5044 = vst [vmem:[#allocation11_spill] sm:$0xff] %v4468_v2  ;;  %v536_v19 = vor.u32 %v535_v58, %v531_v34  ;;  %5046 = vst [vmem:[#allocation13_spill] sm:$0xff] %v4501_v53  ;;  %v3759_v34 = vld [vmem:[%s5010_s1 + $0x404] ss:$8 sps:$4 sm:$0xff]   ;;  %v543_v58 = vshrl.u32 %v4461_v46, 16 }
  0x85   : > { %1723 = vmatpush1.bf16.msra.mxu1 %v3735_v23  ;;  %v610_v23 = vrot.slane %v3728_v39, 1 }
  0x86   : > { %2029 = vmatpush1.bf16.msra.mxu0 %v4448_v14  ;;  %1724 = vmatprep.subr.bf16.mxu1 %v3745_v25  ;;  %v545_v25 = vshll.u32 %v4461_v46, 16 }
  0x87   : > { %2030 = vmatprep.subr.bf16.mxu0 %v4457_v26  ;;  %1646 = vmatmul.mubr.bf16.gmra.mrb[28].mxu1 %v4292_v61  ;;  %v3751_v26 = vld [vmem:[%s5010_s1 + $0x1f0] ss:$8 sps:$4 sm:$0xff]   ;;  %v4515_v14 = vsel %vm578_vm1, %v609_v10, %v610_v23  ;;  %v613_v10 = vrot.slane %v3739_v24, 1 }
  0x88   : > { %1952 = vmatmul.mubr.bf16.gmra.mrb[28].mxu0 %v4464_v55  ;;  %1655 = vmatprep.mubr.bf16.mxu1 %v4464_v55  ;;  %v547_v55 = vrot.slane %v545_v25, 1  ;;  %5048 = vst [vmem:[#allocation15_spill] sm:$0xff] %v4515_v14  ;;  %v562_v25 = vshll.u32 %v3739_v24, 16 }
  0x89   : > { %1961 = vmatprep.mubr.bf16.mxu0 %v4468_v2  ;;  %1725 = vmatpush1.bf16.msra.mxu1 %v3743_v16  ;;  %v4508_v16 = vsel %vm421_vm0, %v536_v19, %v540_v8  ;;  %v550_v2 = vshll.u32 %v3728_v39, 16 }
  0x8a   : > { %2031 = vmatpush1.bf16.msra.mxu0 %v4477_v40  ;;  %1726 = vmatprep.subr.bf16.mxu1 %v3753_v3  ;;  %5047 = vst [vmem:[#allocation14_spill] sm:$0xff] %v4508_v16  ;;  %v4512_v40 = vld [vmem:[%s3996_s24 + $0x84] sm:$0xff]   ;;  %v548_v39 = vor.u32 %v547_v55, %v543_v58 }
  0x8b   : > { %2032 = vmatprep.subr.bf16.mxu0 %v4486_v6  ;;  %v552_v3 = vrot.slane %v550_v2, 1  ;;  %v557_v8 = vshll.u32 %v4512_v40, 16  ;;  %v564_v2 = vrot.slane %v562_v25, 1 }
  0x8d   : > { %1727 = vmatpush1.bf16.msra.mxu1 %v3751_v26  ;;  %v612_v26 = vrot.slane %v4512_v40, 1  ;;  %v4527_v19 = vsel %vm421_vm0, %v548_v39, %v552_v3  ;;  %v559_v23 = vrot.slane %v557_v8, 1 }
  0x8e   : > { %2033 = vmatpush1.bf16.msra.mxu0 %v4501_v53  ;;  %3286 = vmatprep.subr.bf16.mxu1 %v4088_v27  ;;  %v555_v27 = vshrl.u32 %v4512_v40, 16 }
  0x8f   : > { %2155 = vmatprep.subr.bf16.mxu0 %v3759_v34  ;;  %1656 = vmatmul.mubr.bf16.gmra.mrb[32].mxu1 %v4356_v49  ;;  %v4531_v34 = vld [vmem:[%s3996_s24 + $0x90] sm:$0xff]  }
  0x90   : > { %1962 = vmatmul.mubr.bf16.gmra.mrb[32].mxu0 %v4508_v16  ;;  %1665 = vmatprep.mubr.bf16.mxu1 %v4508_v16  ;;  %v4534_v16 = vsel %vm578_vm1, %v612_v26, %v613_v10  ;;  %v560_v55 = vor.u32 %v559_v23, %v555_v27  ;;  %v639_v58 = vshll.u32 %v4531_v34, 16  ;;  %v649_v24 = vrot.slane %v4531_v34, 1 }
  0x91   : > { %1971 = vmatprep.mubr.bf16.mxu0 %v4515_v14  ;;  %v3750_v14 = vld [vmem:[%s3996_s24 + $0x98] ss:$0 sps:$4 sm:$0x11]   ;;  %v637_v8 = vshrl.u32 %v4531_v34, 16 }
  0x92   : > { %v650_v39 = vrot.slane %v3750_v14, 1  ;;  %v4544_v3 = vsel %vm421_vm0, %v560_v55, %v564_v2  ;;  %v641_v26 = vrot.slane %v639_v58, 1  ;;  %v644_v10 = vshll.u32 %v3750_v14, 16  ;;  %v3757_v14 = vld [vmem:[%s5010_s1 + $0x400] ss:$8 sps:$4 sm:$0xff]   ;;  %v2543_v2 = vld [vmem:[%s5011_s2 + $0x98] sm:$0xff] }
  0x93   : > { %v3762_v55 = vld [vmem:[%s5010_s1 + $0x414] ss:$8 sps:$4 sm:$0xff]   ;;  %v5056_v58 = vld [vmem:[#allocation3_spill] sm:$0xff] }
  0x94   : > { %v4548_v53 = vsel %vm578_vm1, %v649_v24, %v650_v39  ;;  %v642_v27 = vor.u32 %v641_v26, %v637_v8  ;;  %v646_v23 = vrot.slane %v644_v10, 1  ;;  %v2544_v24 = vld [vmem:[%s5011_s2 + $0xa0] sm:$0xff]  ;;  %v5057_v39 = vld [vmem:[#allocation12_spill] sm:$0xff]  ;;  %v2545_v8 = vld [vmem:[%s5011_s2 + $0xa8] sm:$0xff] }
  0x95   : > { %v5058_v26 = vld [vmem:[#allocation13_spill] sm:$0xff] }
  0x96   : > { %v4555_v25 = vsel %vm421_vm0, %v642_v27, %v646_v23  ;;  %v2547_v10 = vld [vmem:[%s5011_s2 + $0xb8] sm:$0xff]  ;;  %v5061_v23 = vld [vmem:[#allocation15_spill] sm:$0xff] }
  0x97   : > { %1666 = vmatmul.mubr.bf16.gmra.mrb[36].mxu1 %v4408_v28  ;;  %v5059_v27 = vld [vmem:[#allocation5_spill] sm:$0xff] }
  0x98   : > { %1972 = vmatmul.mubr.bf16.gmra.mrb[36].mxu0 %v4527_v19  ;;  %1675 = vmatprep.mubr.bf16.mxu1 %v4527_v19 }
  0x99   : > { %1981 = vmatprep.mubr.bf16.mxu0 %v4534_v16 }
  0x9f   : > { %1676 = vmatmul.mubr.bf16.gmra.mrb[40].mxu1 %v4461_v46 }
  0xa0   : > { %1982 = vmatmul.mubr.bf16.gmra.mrb[40].mxu0 %v4544_v3  ;;  %1685 = vmatprep.mubr.bf16.mxu1 %v4544_v3 }
  0xa1   : > { %1991 = vmatprep.mubr.bf16.mxu0 %v4548_v53 }
  0xa7   : > { %1686 = vmatmul.mubr.bf16.gmra.mrb[44].mxu1 %v4512_v40 }
  0xa8   : > { %1992 = vmatmul.mubr.bf16.gmra.mrb[44].mxu0 %v4555_v25  ;;  %1728 = vmatprep.mubr.bf16.mxu1 %v4018_v52  ;;  %v3760_v52 = vld [vmem:[%s5010_s1 + $0x410] ss:$8 sps:$4 sm:$0xff]  }
  0xa9   : > { %2034 = vmatprep.mubr.bf16.mxu0 %v4143_v51  ;;  %v2524_v51 = vld [vmem:[%s5011_s2] sm:$0xff] }
  0xaa   : > { %2550 = vperm.xlu0 %3537, %v2524_v51  }
  0xaf   : > { %1729 = vmatmul.mubr.bf16.vlgmr.msra.gmra.mrb[0].mxu1 %v4052_v9  ;;  %v3765_v9 = vld [vmem:[%s5010_s1 + $0x424] ss:$8 sps:$4 sm:$0xff]  }
  0xb0   : > { %2035 = vmatmul.mubr.bf16.vlgmr.msra.gmra.mrb[0].mxu0 %v4066_v17  ;;  %3302 = vmatpush1.bf16.msra.mxu1 %v4096_v29  ;;  %v3763_v29 = vld [vmem:[%s5010_s1 + $0x420] ss:$8 sps:$4 sm:$0xff]  }
  0xb1   : > { %2156 = vmatpush1.bf16.msra.mxu0 %v3757_v14  ;;  %3287 = vmatprep.subr.bf16.mxu1 %v4111_v38  ;;  %v2525_v38 = vld [vmem:[%s5011_s2 + $0x8] sm:$0xff]  ;;  %v3781_v14 = vld [vmem:[%s3996_s24 + $0x9c] sm:$0xff]  }
  0xb2   : > { %1738 = vmatprep.mubr.bf16.mxu1 %v4066_v17  ;;  %2044 = vmatprep.mubr.bf16.mxu0 %v4207_v15  ;;  %v3768_v17 = vld [vmem:[%s5010_s1 + $0x434] ss:$8 sps:$4 sm:$0xff]  }
  0xb3   : > { %2157 = vmatprep.subr.bf16.mxu0 %v3762_v55  ;;  %2555 = vperm.xlu0 %3537, %v2525_v38   ;;  %v3780_v15 = vld [vmem:[%s5010_s1 + $0x474] ss:$8 sps:$4 sm:$0xff]   ;;  %v665_v55 = vshll.u32 %v3781_v14, 16 }
  0xb4   : > { %3303 = vmatpush1.bf16.msra.mxu1 %v4124_v42  ;;  %v2526_v42 = vld [vmem:[%s5011_s2 + $0x10] sm:$0xff] }
  0xb5   : > { %2158 = vmatpush1.bf16.msra.mxu0 %v3760_v52  ;;  %3288 = vmatprep.subr.bf16.mxu1 %v4134_v47  ;;  %v3769_v47 = vld [vmem:[%s5010_s1 + $0x440] ss:$8 sps:$4 sm:$0xff]   ;;  %v663_v52 = vshrl.u32 %v3781_v14, 16  ;;  %v667_v51 = vrot.slane %v665_v55, 1 }
  0xb6   : > { %2159 = vmatprep.subr.bf16.mxu0 %v3765_v9  ;;  %2560 = vperm.xlu1 %3538, %v2526_v42  }
  0xb7   : > { %1739 = vmatmul.mubr.bf16.gmra.mrb[4].mxu1 %v4041_v5  ;;  %v3766_v5 = vld [vmem:[%s5010_s1 + $0x430] ss:$8 sps:$4 sm:$0xff]  }
  0xb8   : > { %2045 = vmatmul.mubr.bf16.gmra.mrb[4].mxu0 %v4102_v36  ;;  %3304 = vmatpush1.bf16.msra.mxu1 %v4153_v57  ;;  %v3774_v57 = vld [vmem:[%s5010_s1 + $0x454] ss:$8 sps:$4 sm:$0xff]  }
  0xb9   : > { %1748 = vmatprep.mubr.bf16.mxu1 %v4102_v36  ;;  %2054 = vmatprep.mubr.bf16.mxu0 %v4254_v37  ;;  %v3771_v36 = vld [vmem:[%s5010_s1 + $0x444] ss:$8 sps:$4 sm:$0xff]  }
  0xba   : > { %2160 = vmatpush1.bf16.msra.mxu0 %v3763_v29  ;;  %3289 = vmatprep.subr.bf16.mxu1 %v4169_v62  ;;  %v2527_v62 = vld [vmem:[%s5011_s2 + $0x18] sm:$0xff]  ;;  %v2532_v37 = vld [vmem:[%s5011_s2 + $0x40] sm:$0xff] }
  0xbb   : > { %2161 = vmatprep.subr.bf16.mxu0 %v3768_v17  ;;  %2565 = vperm.xlu1 %3538, %v2527_v62  }
  0xbc   : > { %3305 = vmatpush1.bf16.msra.mxu1 %v4177_v1  ;;  %v2528_v1 = vld [vmem:[%s5011_s2 + $0x20] sm:$0xff] }
  0xbd   : > { %3290 = vmatprep.subr.bf16.mxu1 %v4190_v7  ;;  %v3772_v7 = vld [vmem:[%s5010_s1 + $0x450] ss:$8 sps:$4 sm:$0xff]   ;;  %2570 = vperm.xlu0 %3537, %v2528_v1  }
  0xbe   : > { %2162 = vmatpush1.bf16.msra.mxu0 %v3766_v5 }
  0xbf   : > { %2163 = vmatprep.subr.bf16.mxu0 %v3771_v36  ;;  %1749 = vmatmul.mubr.bf16.gmra.mrb[8].mxu1 %v4119_v41 }
  0xc0   : > { %2055 = vmatmul.mubr.bf16.gmra.mrb[8].mxu0 %v4148_v56  ;;  %1758 = vmatprep.mubr.bf16.mxu1 %v4148_v56  ;;  %v3777_v56 = vld [vmem:[%s5010_s1 + $0x464] ss:$8 sps:$4 sm:$0xff]  }
  0xc1   : > { %2064 = vmatprep.mubr.bf16.mxu0 %v4306_v4  ;;  %3306 = vmatpush1.bf16.msra.mxu1 %v4199_v12  ;;  %v3775_v12 = vld [vmem:[%s5010_s1 + $0x460] ss:$8 sps:$4 sm:$0xff]  }
  0xc2   : > { %2164 = vmatpush1.bf16.msra.mxu0 %v3769_v47  ;;  %3291 = vmatprep.subr.bf16.mxu1 %v4221_v21  ;;  %v2529_v21 = vld [vmem:[%s5011_s2 + $0x28] sm:$0xff] }
  0xc3   : > { %2165 = vmatprep.subr.bf16.mxu0 %v3774_v57  ;;  %2575 = vperm.xlu1 %3538, %v2529_v21   ;;  %v2537_v4 = vld [vmem:[%s5011_s2 + $0x68] sm:$0xff] }
  0xc5   : > { %3307 = vmatpush1.bf16.msra.mxu1 %v4236_v30  ;;  %v2530_v30 = vld [vmem:[%s5011_s2 + $0x30] sm:$0xff] }
  0xc6   : > { %2166 = vmatpush1.bf16.msra.mxu0 %v3772_v7  ;;  %3292 = vmatprep.subr.bf16.mxu1 %v4245_v32  ;;  %v3778_v32 = vld [vmem:[%s5010_s1 + $0x470] ss:$8 sps:$4 sm:$0xff]  }
  0xc7   : > { %2167 = vmatprep.subr.bf16.mxu0 %v3777_v56  ;;  %1759 = vmatmul.mubr.bf16.gmra.mrb[12].mxu1 %v4158_v59 }
  0xc8   : > { %2065 = vmatmul.mubr.bf16.gmra.mrb[12].mxu0 %v4202_v13  ;;  %1768 = vmatprep.mubr.bf16.mxu1 %v4202_v13  ;;  %v2531_v13 = vld [vmem:[%s5011_s2 + $0x38] sm:$0xff] }
  0xc9   : > { %2074 = vmatprep.mubr.bf16.mxu0 %v4359_v50  ;;  %3308 = vmatpush1.bf16.msra.mxu1 %v4260_v43  ;;  %v2533_v43 = vld [vmem:[%s5011_s2 + $0x48] sm:$0xff]  ;;  %v5052_v50 = vld [vmem:[#allocation6_spill] sm:$0xff] }
  0xca   : > { %2168 = vmatpush1.bf16.msra.mxu0 %v3775_v12  ;;  %3293 = vmatprep.subr.bf16.mxu1 %v4274_v48  ;;  %v2534_v48 = vld [vmem:[%s5011_s2 + $0x50] sm:$0xff] }
  0xcb   : > { %2169 = vmatprep.subr.bf16.mxu0 %v3780_v15  ;;  %2580 = vperm.xlu0 %3537, %v2530_v30  }
  0xcc   : > { %2585 = vperm.xlu1 %3538, %v2531_v13  }
  0xcd   : > { %3309 = vmatpush1.bf16.msra.mxu1 %v4289_v60  ;;  %v2536_v60 = vld [vmem:[%s5011_s2 + $0x60] sm:$0xff] }
  0xce   : > { %2170 = vmatpush1.bf16.msra.mxu0 %v3778_v32  ;;  %3294 = vmatprep.subr.bf16.mxu1 %v4301_v0  ;;  %v5049_v0 = vmov 0  }
  0xcf   : > { %1769 = vmatmul.mubr.bf16.gmra.mrb[16].mxu1 %v4211_v18  ;;  %2590 = vperm.xlu0 %3537, %v2532_v37  }
  0xd0   : > { %2075 = vmatmul.mubr.bf16.gmra.mrb[16].mxu0 %v4251_v35  ;;  %1778 = vmatprep.mubr.bf16.mxu1 %v4251_v35  ;;  %v2535_v35 = vld [vmem:[%s5011_s2 + $0x58] sm:$0xff] }
  0xd1   : > { %2084 = vmatprep.mubr.bf16.mxu0 %v4411_v31  ;;  %3310 = vmatpush1.bf16.msra.mxu1 %v4314_v11  ;;  %v2538_v11 = vld [vmem:[%s5011_s2 + $0x70] sm:$0xff]  ;;  %v5055_v31 = vld [vmem:[#allocation9_spill] sm:$0xff] }
  0xd2   : > { %3295 = vmatprep.subr.bf16.mxu1 %v4327_v20  ;;  %2595 = vperm.xlu1 %3538, %v2533_v43   ;;  %v2539_v20 = vld [vmem:[%s5011_s2 + $0x78] sm:$0xff] }
  0xd3   : > { %2600 = vperm.xlu0 %3537, %v2534_v48  }
  0xd5   : > { %3311 = vmatpush1.bf16.msra.mxu1 %v4343_v33  ;;  %v5051_v33 = vld [vmem:[#allocation2_spill] sm:$0xff] }
  0xd6   : > { %3296 = vmatprep.subr.bf16.mxu1 %v4353_v45  ;;  %2605 = vperm.xlu1 %3538, %v2535_v35   ;;  %v2540_v45 = vld [vmem:[%s5011_s2 + $0x80] sm:$0xff] }
  0xd7   : > { %1779 = vmatmul.mubr.bf16.gmra.mrb[20].mxu1 %v4263_v44  ;;  %2610 = vperm.xlu0 %3537, %v2536_v60  }
  0xd8   : > { %2085 = vmatmul.mubr.bf16.gmra.mrb[20].mxu0 %v4292_v61  ;;  %1788 = vmatprep.mubr.bf16.mxu1 %v4292_v61  ;;  %v5050_v61 = vld [vmem:[#allocation4_spill] sm:$0xff] }
  0xd9   : > { %2187 = vmatprep.mubr.bf16.mxu0 %v5049_v0  ;;  %3312 = vmatpush1.bf16.msra.mxu1 %v4367_v54  ;;  %v5053_v54 = vld [vmem:[#allocation7_spill] sm:$0xff] }
  0xda   : > { %3297 = vmatprep.subr.bf16.mxu1 %v4380_v63  ;;  %2615 = vperm.xlu1 %3538, %v2537_v4   ;;  %v2541_v63 = vld [vmem:[%s5011_s2 + $0x88] sm:$0xff] }
  0xdb   : > { %2620 = vperm.xlu0 %3537, %v2538_v11  }
  0xdd   : > { %3313 = vmatpush1.bf16.msra.mxu1 %v4394_v22  ;;  %v5054_v22 = vld [vmem:[#allocation8_spill] sm:$0xff] }
  0xde   : > { %3298 = vmatprep.subr.bf16.mxu1 %v5050_v61  ;;  %2625 = vperm.xlu1 %3538, %v2539_v20  }
  0xdf   : > { %1789 = vmatmul.mubr.bf16.gmra.mrb[24].mxu1 %v5051_v33  ;;  %2630 = vperm.xlu0 %3537, %v2540_v45  }
  0xe0   : > { %2188 = vmatmul.mubr.bf16.vlgmr.msra.gmra.mrb[0].mxu0 %v4119_v41  ;;  %1798 = vmatprep.mubr.bf16.mxu1 %v4356_v49  ;;  %v2542_v41 = vld [vmem:[%s5011_s2 + $0x90] sm:$0xff] }
  0xe1   : > { %2197 = vmatprep.mubr.bf16.mxu0 %v5049_v0  ;;  %3314 = vmatpush1.bf16.msra.mxu1 %v5052_v50 }
  0xe2   : > { %3299 = vmatprep.subr.bf16.mxu1 %v5053_v54  ;;  %2635 = vperm.xlu1 %3538, %v2541_v63  }
  0xe3   : > { %2640 = vperm.xlu0 %3537, %v2542_v41  }
  0xe5   : > { %3315 = vmatpush1.bf16.msra.mxu1 %v5054_v22 }
  0xe6   : > { %3300 = vmatprep.subr.bf16.mxu1 %v5055_v31  ;;  %2645 = vperm.xlu1 %3538, %v2543_v2  }
  0xe7   : > { %1799 = vmatmul.mubr.bf16.gmra.mrb[28].mxu1 %v5056_v58  ;;  %2650 = vperm.xlu0 %3537, %v2544_v24  }
  0xe8   : > { %2198 = vmatmul.mubr.bf16.gmra.mrb[4].mxu0 %v4158_v59  ;;  %1808 = vmatprep.mubr.bf16.mxu1 %v4408_v28  ;;  %v2546_v59 = vld [vmem:[%s5011_s2 + $0xb0] sm:$0xff] }
  0xe9   : > { %2207 = vmatprep.mubr.bf16.mxu0 %v5049_v0  ;;  %3316 = vmatpush1.bf16.msra.mxu1 %v5057_v39 }
  0xea   : > { %3301 = vmatprep.subr.bf16.mxu1 %v4486_v6  ;;  %2655 = vperm.xlu1 %3538, %v2545_v8   ;;  %v5060_v6 = vld [vmem:[#allocation11_spill] sm:$0xff] }
  0xeb   : > { %2660 = vperm.xlu0 %3537, %v2546_v59  }
  0xed   : > { %3317 = vmatpush1.bf16.msra.mxu1 %v5058_v26 }
  0xee   : > { %2665 = vperm.xlu1 %3538, %v2547_v10  }
  0xef   : > { %1809 = vmatmul.mubr.bf16.gmra.mrb[32].mxu1 %v5059_v27 }
  0xf0   : > { %2208 = vmatmul.mubr.bf16.gmra.mrb[8].mxu0 %v4211_v18  ;;  %1818 = vmatprep.mubr.bf16.mxu1 %v4461_v46  ;;  %v5062_v18 = vld [vmem:[#allocation10_spill] sm:$0xff] }
  0xf1   : > { %2217 = vmatprep.mubr.bf16.mxu0 %v5049_v0 }
  0xf7   : > { %1819 = vmatmul.mubr.bf16.gmra.mrb[36].mxu1 %v5060_v6 }
  0xf8   : > { %2218 = vmatmul.mubr.bf16.gmra.mrb[12].mxu0 %v4263_v44  ;;  %1828 = vmatprep.mubr.bf16.mxu1 %v4512_v40  ;;  %v5063_v44 = vld [vmem:[#allocation14_spill] sm:$0xff] }
  0xf9   : > { %2227 = vmatprep.mubr.bf16.mxu0 %v5049_v0 }
  0xff   : > { %1829 = vmatmul.mubr.bf16.gmra.mrb[40].mxu1 %v5061_v23 }
 0x100   : > { %2228 = vmatmul.mubr.bf16.gmra.mrb[16].mxu0 %v5051_v33  ;;  %1838 = vmatprep.mubr.bf16.mxu1 %v4531_v34 }
 0x101   : > { %2237 = vmatprep.mubr.bf16.mxu0 %v5049_v0 }
 0x107   : > { %1839 = vmatmul.mubr.bf16.gmra.mrb[44].mxu1 %v4534_v16 }
 0x108   : > { %2238 = vmatmul.mubr.bf16.gmra.mrb[20].mxu0 %v5056_v58  ;;  %2094 = vmatprep.mubr.bf16.mxu1 %v5062_v18 }
 0x109   : > { %2247 = vmatprep.mubr.bf16.mxu0 %v5049_v0 }
 0x10f   : > { %2095 = vmatmul.mubr.bf16.vlgmr.msra.gmra.mrb[48].mxu1 %v4356_v49  ;;  %v3782_v49 = vld [vmem:[%s3996_s24 + $0xa4] ss:$0 sps:$4 sm:$0x11]   ;;  %s3511_s24 = smul.u32 192, %s5085_s15 }
 0x110   : > { %2248 = vmatmul.mubr.bf16.gmra.mrb[48].mxu0 %v5059_v27  ;;  %2104 = vmatprep.mubr.bf16.mxu1 %v5063_v44  ;;  %v676_v29 = vrot.slane %v3782_v49, 1 }
 0x111   : > { %2257 = vmatprep.mubr.bf16.mxu0 %v5049_v0  ;;  %s4864_s20 = scalar_lea.vmem %s5012_s3, %s3511_s24 }
 0x117   : > { %2105 = vmatmul.mubr.bf16.gmra.mrb[52].mxu1 %v4408_v28  ;;  %v670_v28 = vshll.u32 %v3782_v49, 16 }
 0x118   : > { %2258 = vmatmul.mubr.bf16.gmra.mrb[52].mxu0 %v5060_v6  ;;  %2114 = vmatprep.mubr.bf16.mxu1 %v4527_v19 }
 0x119   : > { %2267 = vmatprep.mubr.bf16.mxu0 %v5049_v0  ;;  %v672_v19 = vrot.slane %v670_v28, 1 }
 0x11f   : > { %2115 = vmatmul.mubr.bf16.gmra.mrb[56].mxu1 %v4461_v46  ;;  %v668_v46 = vor.u32 %v667_v51, %v663_v52 }
 0x120   : > { %2268 = vmatmul.mubr.bf16.gmra.mrb[56].mxu0 %v5061_v23  ;;  %2124 = vmatprep.mubr.bf16.mxu1 %v4544_v3  ;;  %v675_v3 = vrot.slane %v3781_v14, 1 }
 0x121   : > { %2277 = vmatprep.mubr.bf16.mxu0 %v5049_v0  ;;  %v673_v9 = vsel %vm421_vm0, %v668_v46, %v672_v19 }
 0x127   : > { %2125 = vmatmul.mubr.bf16.gmra.mrb[60].mxu1 %v4512_v40  ;;  %v677_v40 = vsel %vm578_vm1, %v675_v3, %v676_v29 }
 0x128   : > { %2278 = vmatmul.mubr.bf16.gmra.mrb[60].mxu0 %v4534_v16  ;;  %2134 = vmatprep.mubr.bf16.mxu1 %v4555_v25 }
 0x129   : > { %2287 = vmatprep.mubr.bf16.mxu0 %v5049_v0  ;;  %v2551_v6 = vpop.permute.xlu0 %2550 }
 0x12f   : > { %2135 = vmatmul.mubr.bf16.gmra.mrb[64].mxu1 %v4531_v34 }
 0x130   : > { %2288 = vmatmul.mubr.bf16.gmra.mrb[64].mxu0 %v4548_v53  ;;  %2144 = vmatprep.mubr.bf16.mxu1 %v673_v9 }
 0x131   : > { %2297 = vmatprep.mubr.bf16.mxu0 %v5049_v0 }
 0x137   : > { %2145 = vmatmul.mubr.bf16.gmra.mrb[68].mxu1 %v3781_v14 }
 0x138   : > { %2298 = vmatmul.mubr.bf16.gmra.mrb[68].mxu0 %v677_v40 }
 0x153   : > { %v1943_v16 = vpop.f32.mrb[24].mxu0 }
 0x154   : > { %v1945_v25 = vpop.f32.mrb[25].mxu0 }
 0x155   : > { %v1947_v17 = vpop.f32.mrb[26].mxu0 }
 0x156   : > { %v4780_v38 = vpop.f32.mrb[27].mxu0 }
 0x15b   : > { %v4782_v42 = vpop.f32.mrb[28].mxu0 }
 0x15c   : > { %v4784_v5 = vpop.f32.mrb[29].mxu0 }
 0x15d   : > { %v4786_v34 = vpop.f32.mrb[30].mxu0 }
 0x15e   : > { %v4788_v53 = vpop.f32.mrb[31].mxu0 }
 0x163   : > { %v4790_v36 = vpop.f32.mrb[32].mxu0 }
 0x164   : > { %v4792_v47 = vpop.f32.mrb[33].mxu0 }
 0x165   : > { %v4794_v57 = vpop.f32.mrb[34].mxu0 }
 0x166   : > { %v4796_v62 = vpop.f32.mrb[35].mxu0 }
 0x16b   : > { %v4798_v1 = vpop.f32.mrb[36].mxu0 }
 0x16c   : > { %v4800_v7 = vpop.f32.mrb[37].mxu0 }
 0x16d   : > { %v4802_v56 = vpop.f32.mrb[38].mxu0 }
 0x16e   : > { %v4804_v12 = vpop.f32.mrb[39].mxu0 }
 0x173   : > { %v4806_v15 = vpop.f32.mrb[40].mxu0 }
 0x174   : > { %v4808_v21 = vpop.f32.mrb[41].mxu0 }
 0x175   : > { %v4810_v30 = vpop.f32.mrb[42].mxu0 }
 0x176   : > { %v4812_v32 = vpop.f32.mrb[43].mxu0 }
 0x17b   : > { %v4814_v13 = vpop.f32.mrb[44].mxu0 }
 0x17c   : > { %v4816_v37 = vpop.f32.mrb[45].mxu0 }
 0x17d   : > { %v4818_v43 = vpop.f32.mrb[46].mxu0 }
 0x17e   : > { %v4820_v48 = vpop.f32.mrb[47].mxu0 }
 0x182   : > { %v1730_v35 = vpop.f32.mrb[0].mxu1 }
 0x183   : > { %v1732_v60 = vpop.f32.mrb[1].mxu1 }
 0x184   : > { %v1734_v0 = vpop.f32.mrb[2].mxu1 }
 0x185   : > { %v1736_v4 = vpop.f32.mrb[3].mxu1 }
 0x18a   : > { %v1740_v11 = vpop.f32.mrb[4].mxu1 }
 0x18b   : > { %v1742_v61 = vpop.f32.mrb[5].mxu1 }
 0x18c   : > { %v1744_v20 = vpop.f32.mrb[6].mxu1 }
 0x18d   : > { %v4822_v33 = vpop.f32.mrb[7].mxu1 }
 0x192   : > { %v4824_v45 = vpop.f32.mrb[8].mxu1 }
 0x193   : > { %v4826_v50 = vpop.f32.mrb[9].mxu1 }
 0x194   : > { %v4828_v54 = vpop.f32.mrb[10].mxu1 }
 0x195   : > { %v4830_v63 = vpop.f32.mrb[11].mxu1 }
 0x19a   : > { %v4832_v41 = vpop.f32.mrb[12].mxu1 }
 0x19b   : > { %v4834_v22 = vpop.f32.mrb[13].mxu1 }
 0x19c   : > { %v4836_v31 = vpop.f32.mrb[14].mxu1 }
 0x19d   : > { %v4838_v2 = vpop.f32.mrb[15].mxu1 }
 0x1a2   : > { %v4840_v58 = vpop.f32.mrb[16].mxu1 }
 0x1a3   : > { %v4842_v24 = vpop.f32.mrb[17].mxu1 }
 0x1a4   : > { %v4844_v39 = vpop.f32.mrb[18].mxu1 }
 0x1a5   : > { %v4846_v8 = vpop.f32.mrb[19].mxu1 }
 0x1aa   : > { %v4848_v59 = vpop.f32.mrb[20].mxu1 }
 0x1ab   : > { %v4850_v26 = vpop.f32.mrb[21].mxu1 }
 0x1ac   : > { %v4852_v10 = vpop.f32.mrb[22].mxu1 }
 0x1ad   : > { %v4854_v27 = vpop.f32.mrb[23].mxu1 }
 0x1b2   : > { %v1790_v23 = vpop.f32.mrb[24].mxu1 }
 0x1b3   : > { %v2189_v18 = vpop.f32.mrb[0].mxu0  ;;  %v4857_v44 = vadd.f32 %v1943_v16, %v1790_v23  ;;  %v1792_v49 = vpop.f32.mrb[25].mxu1 }
 0x1b4   : > { %v3318_v14 = vadd.f32 %v2189_v18, %v1730_v35  ;;  %v2191_v55 = vpop.f32.mrb[1].mxu0  ;;  %v4859_v52 = vadd.f32 %v1945_v25, %v1792_v49  ;;  %v1794_v28 = vpop.f32.mrb[26].mxu1 }
 0x1b5   : > { %5064 = vst [vmem:[#allocation4_spill] sm:$0xff] %v4857_v44  ;;  %v3319_v51 = vadd.f32 %v2191_v55, %v1732_v60  ;;  %v2193_v46 = vpop.f32.mrb[2].mxu0  ;;  %v4866_v19 = vadd.f32 %v1947_v17, %v1794_v28  ;;  %v1796_v3 = vpop.f32.mrb[27].mxu1 }
 0x1b6   : > { %5065 = vst [vmem:[#allocation2_spill] sm:$0xff] %v4859_v52  ;;  %v3320_v9 = vadd.f32 %v2193_v46, %v1734_v0  ;;  %v2195_v29 = vpop.f32.mrb[3].mxu0  ;;  %v4869_v16 = vadd.f32 %v4780_v38, %v1796_v3  ;;  %v2556_v49 = vpop.permute.xlu0 %2555 }
 0x1b7   : > { %5066 = vst [vmem:[#allocation6_spill] sm:$0xff] %v4866_v19  ;;  %v3262_v40 = vpack.c.bf16 %v3319_v51, %v3318_v14  ;;  %v3321_v25 = vadd.f32 %v2195_v29, %v1736_v4  ;;  %v2561_v52 = vpop.permute.xlu1 %2560 }
 0x1b8   : > { %5067 = vst [vmem:[#allocation7_spill] sm:$0xff] %v4869_v16  ;;  %v2308_v35 = vpack.c.bf16 %v3320_v9, %v3318_v14 }
 0x1b9   : > { %2452 = vst [vmem:[%s4864_s20] sm:$0xff] %v3262_v40  ;;  %v2309_v60 = vpack.c.bf16 %v3321_v25, %v3319_v51  ;;  %v3263_v23 = vpack.c.bf16 %v3321_v25, %v3320_v9 }
 0x1ba   : > { %v2476_v18 = vunpack.c.l.bf16 %v2308_v35  ;;  %v2478_v55 = vunpack.c.h.bf16 %v2308_v35  ;;  %v1800_v28 = vpop.f32.mrb[28].mxu1 }
 0x1bb   : > { %2453 = vst [vmem:[%s4864_s20 + $0x8] sm:$0xff] %v3263_v23  ;;  %v2477_v44 = vunpack.c.l.bf16 %v2309_v60  ;;  %v2479_v17 = vunpack.c.h.bf16 %v2309_v60  ;;  %v2199_v0 = vpop.f32.mrb[4].mxu0  ;;  %v4874_v46 = vadd.f32 %v4782_v42, %v1800_v28  ;;  %v1802_v38 = vpop.f32.mrb[29].mxu1 }
 0x1bc   : > { %v3322_v19 = vadd.f32 %v2199_v0, %v1740_v11  ;;  %v2201_v3 = vpop.f32.mrb[5].mxu0  ;;  %v4877_v4 = vadd.f32 %v4784_v5, %v1802_v38  ;;  %v1804_v51 = vpop.f32.mrb[30].mxu1  ;;  %v2668_v29 = vmul.f32 %v2551_v6, %v2476_v18  ;;  %v2670_v40 = vmul.f32 %v2556_v49, %v2478_v55 }
 0x1bd   : > { %5068 = vst [vmem:[#allocation8_spill] sm:$0xff] %v4874_v46  ;;  %v3323_v14 = vadd.f32 %v2201_v3, %v1742_v61  ;;  %v2203_v9 = vpop.f32.mrb[6].mxu0  ;;  %v4880_v25 = vadd.f32 %v4786_v34, %v1804_v51  ;;  %v1806_v60 = vpop.f32.mrb[31].mxu1  ;;  %v2669_v42 = vmul.f32 %v2551_v6, %v2477_v44  ;;  %v2671_v28 = vmul.f32 %v2556_v49, %v2479_v17 }
 0x1be   : > { %5069 = vst [vmem:[#allocation9_spill] sm:$0xff] %v4877_v4  ;;  %v3324_v35 = vadd.f32 %v2203_v9, %v1744_v20  ;;  %v2205_v23 = vpop.f32.mrb[7].mxu0  ;;  %v4883_v0 = vadd.f32 %v4788_v53, %v1806_v60  ;;  %v2566_v38 = vpop.permute.xlu1 %2565  ;;  %v2774_v51 = vmul.f32 %v2668_v29, %v2668_v29  ;;  %v2776_v9 = vmul.f32 %v2670_v40, %v2670_v40 }
 0x1bf   : > { %5070 = vst [vmem:[#allocation3_spill] sm:$0xff] %v4880_v25  ;;  %v3264_v11 = vpack.c.bf16 %v3323_v14, %v3322_v19  ;;  %v3325_v61 = vadd.f32 %v2205_v23, %v4822_v33  ;;  %v2775_v20 = vmul.f32 %v2669_v42, %v2669_v42  ;;  %v2777_v25 = vmul.f32 %v2671_v28, %v2671_v28 }
 0x1c0   : > { %5071 = vst [vmem:[#allocation12_spill] sm:$0xff] %v4883_v0  ;;  %v2310_v5 = vpack.c.bf16 %v3324_v35, %v3322_v19 }
 0x1c1   : > { %2454 = vst [vmem:[%s4864_s20 + $0x10] sm:$0xff] %v3264_v11  ;;  %v2311_v18 = vpack.c.bf16 %v3325_v61, %v3323_v14  ;;  %v3265_v55 = vpack.c.bf16 %v3325_v61, %v3324_v35 }
 0x1c2   : > { %v2480_v3 = vunpack.c.l.bf16 %v2310_v5  ;;  %v2482_v34 = vunpack.c.h.bf16 %v2310_v5  ;;  %v1810_v6 = vpop.f32.mrb[32].mxu1 }
 0x1c3   : > { %v2209_v44 = vpop.f32.mrb[8].mxu0  ;;  %2455 = vst [vmem:[%s4864_s20 + $0x18] sm:$0xff] %v3265_v55  ;;  %v2481_v49 = vunpack.c.l.bf16 %v2311_v18  ;;  %v2483_v53 = vunpack.c.h.bf16 %v2311_v18  ;;  %v1812_v19 = vpop.f32.mrb[33].mxu1  ;;  %v4889_v33 = vadd.f32 %v4790_v36, %v1810_v6 }
 0x1c4   : > { %v2672_v17 = vmul.f32 %v2561_v52, %v2480_v3  ;;  %v2674_v60 = vmul.f32 %v2566_v38, %v2482_v34  ;;  %v2211_v0 = vpop.f32.mrb[9].mxu0  ;;  %v3326_v14 = vadd.f32 %v2209_v44, %v4824_v45  ;;  %v4893_v35 = vadd.f32 %v4792_v47, %v1812_v19  ;;  %v1814_v11 = vpop.f32.mrb[34].mxu1 }
 0x1c5   : > { %v3327_v23 = vadd.f32 %v2211_v0, %v4826_v50  ;;  %v2213_v5 = vpop.f32.mrb[10].mxu0  ;;  %v2673_v61 = vmul.f32 %v2561_v52, %v2481_v49  ;;  %v2675_v18 = vmul.f32 %v2566_v38, %v2483_v53  ;;  %v1816_v34 = vpop.f32.mrb[35].mxu1  ;;  %v4897_v6 = vadd.f32 %v4794_v57, %v1814_v11 }
 0x1c6   : > { %v2716_v55 = vadd.f32 %v2672_v17, %v2668_v29  ;;  %v2778_v3 = vmul.f32 %v2672_v17, %v2672_v17  ;;  %v2215_v4 = vpop.f32.mrb[11].mxu0  ;;  %v2738_v46 = vadd.f32 %v2674_v60, %v2670_v40  ;;  %v2780_v16 = vmul.f32 %v2674_v60, %v2674_v60  ;;  %v2576_v49 = vpop.permute.xlu1 %2575 }
 0x1c7   : > { %v3266_v36 = vpack.c.bf16 %v3327_v23, %v3326_v14  ;;  %v2727_v45 = vadd.f32 %v2673_v61, %v2669_v42  ;;  %v2779_v47 = vmul.f32 %v2673_v61, %v2673_v61  ;;  %v2749_v19 = vadd.f32 %v2675_v18, %v2671_v28  ;;  %v2571_v17 = vpop.permute.xlu0 %2570 }
 0x1c8   : > { %v2822_v44 = vadd.f32 %v2778_v3, %v2774_v51  ;;  %v2781_v50 = vmul.f32 %v2675_v18, %v2675_v18  ;;  %v2844_v0 = vadd.f32 %v2780_v16, %v2776_v9  ;;  %v3328_v52 = vadd.f32 %v2213_v5, %v4828_v54 }
 0x1c9   : > { %2456 = vst [vmem:[%s4864_s20 + $0x20] sm:$0xff] %v3266_v36  ;;  %v4902_v29 = vadd.f32 %v4796_v62, %v1816_v34  ;;  %v2833_v38 = vadd.f32 %v2779_v47, %v2775_v20  ;;  %v3329_v40 = vadd.f32 %v2215_v4, %v4830_v63 }
 0x1ca   : > { %v2855_v53 = vadd.f32 %v2781_v50, %v2777_v25  ;;  %v2312_v57 = vpack.c.bf16 %v3328_v52, %v3326_v14  ;;  %v1820_v42 = vpop.f32.mrb[36].mxu1 }
 0x1cb   : > { %v2219_v60 = vpop.f32.mrb[12].mxu0  ;;  %v2313_v51 = vpack.c.bf16 %v3329_v40, %v3327_v23  ;;  %v3267_v28 = vpack.c.bf16 %v3329_v40, %v3328_v52  ;;  %v4906_v16 = vadd.f32 %v4798_v1, %v1820_v42  ;;  %v1822_v9 = vpop.f32.mrb[37].mxu1 }
 0x1cc   : > { %v3330_v54 = vadd.f32 %v2219_v60, %v4832_v41  ;;  %v2221_v62 = vpop.f32.mrb[13].mxu0  ;;  %v2486_v11 = vunpack.c.h.bf16 %v2312_v57  ;;  %v2484_v20 = vunpack.c.l.bf16 %v2312_v57  ;;  %v4910_v63 = vadd.f32 %v4800_v7, %v1822_v9  ;;  %v1824_v25 = vpop.f32.mrb[38].mxu1 }
 0x1cd   : > { %v3331_v4 = vadd.f32 %v2221_v62, %v4834_v22  ;;  %v2223_v14 = vpop.f32.mrb[14].mxu0  ;;  %2457 = vst [vmem:[%s4864_s20 + $0x28] sm:$0xff] %v3267_v28  ;;  %v2487_v5 = vunpack.c.h.bf16 %v2313_v51  ;;  %v2485_v23 = vunpack.c.l.bf16 %v2313_v51  ;;  %v4915_v61 = vadd.f32 %v4802_v56, %v1824_v25  ;;  %v1826_v41 = vpop.f32.mrb[39].mxu1 }
 0x1ce   : > { %v3332_v1 = vadd.f32 %v2223_v14, %v4836_v31  ;;  %v2225_v3 = vpop.f32.mrb[15].mxu0  ;;  %v2678_v18 = vmul.f32 %v2576_v49, %v2486_v11  ;;  %v2676_v34 = vmul.f32 %v2571_v17, %v2484_v20  ;;  %v4919_v7 = vadd.f32 %v4804_v12, %v1826_v41  ;;  %v2586_v9 = vpop.permute.xlu1 %2585 }
 0x1cf   : > { %v3268_v36 = vpack.c.bf16 %v3331_v4, %v3330_v54  ;;  %v2679_v22 = vmul.f32 %v2576_v49, %v2487_v5  ;;  %v2677_v47 = vmul.f32 %v2571_v17, %v2485_v23  ;;  %v3333_v52 = vadd.f32 %v2225_v3, %v4838_v2  ;;  %v2581_v62 = vpop.permute.xlu0 %2580 }
 0x1d0   : > { %v2314_v50 = vpack.c.bf16 %v3332_v1, %v3330_v54  ;;  %v2739_v40 = vadd.f32 %v2738_v46, %v2678_v18  ;;  %v2784_v57 = vmul.f32 %v2678_v18, %v2678_v18  ;;  %v2717_v56 = vadd.f32 %v2716_v55, %v2676_v34 }
 0x1d1   : > { %v2782_v42 = vmul.f32 %v2676_v34, %v2676_v34  ;;  %2458 = vst [vmem:[%s4864_s20 + $0x30] sm:$0xff] %v3268_v36  ;;  %v2750_v60 = vadd.f32 %v2749_v19, %v2679_v22  ;;  %v2785_v31 = vmul.f32 %v2679_v22, %v2679_v22  ;;  %v2728_v51 = vadd.f32 %v2727_v45, %v2677_v47 }
 0x1d2   : > { %v2783_v28 = vmul.f32 %v2677_v47, %v2677_v47  ;;  %v2845_v11 = vadd.f32 %v2844_v0, %v2784_v57  ;;  %v2488_v12 = vunpack.c.l.bf16 %v2314_v50  ;;  %v2490_v49 = vunpack.c.h.bf16 %v2314_v50  ;;  %v1830_v17 = vpop.f32.mrb[40].mxu1 }
 0x1d3   : > { %v2823_v20 = vadd.f32 %v2822_v44, %v2782_v42  ;;  %v2229_v54 = vpop.f32.mrb[16].mxu0  ;;  %v2856_v25 = vadd.f32 %v2855_v53, %v2785_v31  ;;  %v2315_v46 = vpack.c.bf16 %v3333_v52, %v3331_v4  ;;  %v3269_v14 = vpack.c.bf16 %v3333_v52, %v3332_v1  ;;  %v1832_v55 = vpop.f32.mrb[41].mxu1 }
 0x1d4   : > { %v2834_v2 = vadd.f32 %v2833_v38, %v2783_v28  ;;  %v2231_v5 = vpop.f32.mrb[17].mxu0  ;;  %v2680_v23 = vmul.f32 %v2581_v62, %v2488_v12  ;;  %v2682_v19 = vmul.f32 %v2586_v9, %v2490_v49  ;;  %v4924_v45 = vadd.f32 %v4806_v15, %v1830_v17  ;;  %v1834_v0 = vpop.f32.mrb[42].mxu1 }
 0x1d5   : > { %v3334_v41 = vadd.f32 %v2229_v54, %v4840_v58  ;;  %v2233_v44 = vpop.f32.mrb[18].mxu0  ;;  %2459 = vst [vmem:[%s4864_s20 + $0x38] sm:$0xff] %v3269_v14  ;;  %v2489_v3 = vunpack.c.l.bf16 %v2315_v46  ;;  %v2491_v18 = vunpack.c.h.bf16 %v2315_v46  ;;  %v4929_v34 = vadd.f32 %v4808_v21, %v1832_v55  ;;  %v1836_v53 = vpop.f32.mrb[43].mxu1 }
 0x1d6   : > { %v3335_v38 = vadd.f32 %v2231_v5, %v4842_v24  ;;  %v2235_v4 = vpop.f32.mrb[19].mxu0  ;;  %v2718_v1 = vadd.f32 %v2717_v56, %v2680_v23  ;;  %v2740_v36 = vadd.f32 %v2739_v40, %v2682_v19  ;;  %v2786_v22 = vmul.f32 %v2680_v23, %v2680_v23  ;;  %v2596_v12 = vpop.permute.xlu1 %2595 }
 0x1d7   : > { %v2788_v15 = vmul.f32 %v2682_v19, %v2682_v19  ;;  %v2681_v47 = vmul.f32 %v2581_v62, %v2489_v3  ;;  %v2683_v50 = vmul.f32 %v2586_v9, %v2491_v18  ;;  %v4933_v52 = vadd.f32 %v4810_v30, %v1834_v0  ;;  %v2591_v49 = vpop.permute.xlu0 %2590 }
 0x1d8   : > { %v3270_v58 = vpack.c.bf16 %v3335_v38, %v3334_v41  ;;  %v2824_v57 = vadd.f32 %v2823_v20, %v2786_v22  ;;  %v3336_v21 = vadd.f32 %v2233_v44, %v4844_v39  ;;  %v4937_v31 = vadd.f32 %v4812_v32, %v1836_v53 }
 0x1d9   : > { %v2846_v42 = vadd.f32 %v2845_v11, %v2788_v15  ;;  %v2729_v24 = vadd.f32 %v2728_v51, %v2681_v47  ;;  %v2751_v28 = vadd.f32 %v2750_v60, %v2683_v50  ;;  %v2787_v56 = vmul.f32 %v2681_v47, %v2681_v47 }
 0x1da   : > { %v2789_v40 = vmul.f32 %v2683_v50, %v2683_v50  ;;  %2460 = vst [vmem:[%s4864_s20 + $0x40] sm:$0xff] %v3270_v58  ;;  %v2316_v62 = vpack.c.bf16 %v3336_v21, %v3334_v41  ;;  %v3337_v9 = vadd.f32 %v2235_v4, %v4846_v8  ;;  %v1840_v17 = vpop.f32.mrb[44].mxu1 }
 0x1db   : > { %v2239_v30 = vpop.f32.mrb[20].mxu0  ;;  %v2835_v54 = vadd.f32 %v2834_v2, %v2787_v56  ;;  %v4942_v11 = vadd.f32 %v4814_v13, %v1840_v17  ;;  %v1842_v39 = vpop.f32.mrb[45].mxu1 }
 0x1dc   : > { %v2857_v20 = vadd.f32 %v2856_v25, %v2789_v40  ;;  %v3338_v32 = vadd.f32 %v2239_v30, %v4848_v59  ;;  %v2241_v60 = vpop.f32.mrb[21].mxu0  ;;  %v2492_v51 = vunpack.c.l.bf16 %v2316_v62  ;;  %v2494_v46 = vunpack.c.h.bf16 %v2316_v62  ;;  %v1844_v5 = vpop.f32.mrb[46].mxu1 }
 0x1dd   : > { %v2317_v14 = vpack.c.bf16 %v3337_v9, %v3335_v38  ;;  %v3271_v55 = vpack.c.bf16 %v3337_v9, %v3336_v21  ;;  %v2243_v23 = vpop.f32.mrb[22].mxu0  ;;  %v4946_v8 = vadd.f32 %v4816_v37, %v1842_v39  ;;  %v3339_v2 = vadd.f32 %v2241_v60, %v4850_v26  ;;  %v1846_v59 = vpop.f32.mrb[47].mxu1 }
 0x1de   : > { %v4950_v25 = vadd.f32 %v4818_v43, %v1844_v5  ;;  %v3340_v13 = vadd.f32 %v2243_v23, %v4852_v10  ;;  %v2245_v19 = vpop.f32.mrb[23].mxu0  ;;  %v2684_v41 = vmul.f32 %v2591_v49, %v2492_v51  ;;  %v2686_v0 = vmul.f32 %v2596_v12, %v2494_v46  ;;  %v2606_v10 = vpop.permute.xlu1 %2605  ;;  %v5073_v23 = vld [vmem:[#allocation2_spill] sm:$0xff] }
 0x1df   : > { %2461 = vst [vmem:[%s4864_s20 + $0x48] sm:$0xff] %v3271_v55  ;;  %v2493_v44 = vunpack.c.l.bf16 %v2317_v14  ;;  %v2495_v3 = vunpack.c.h.bf16 %v2317_v14  ;;  %v3272_v18 = vpack.c.bf16 %v3339_v2, %v3338_v32  ;;  %v4955_v37 = vadd.f32 %v4820_v48, %v1846_v59  ;;  %v2601_v15 = vpop.permute.xlu0 %2600 }
 0x1e0   : > { %v2318_v38 = vpack.c.bf16 %v3340_v13, %v3338_v32  ;;  %v3341_v26 = vadd.f32 %v2245_v19, %v4854_v27  ;;  %v2719_v53 = vadd.f32 %v2718_v1, %v2684_v41  ;;  %v2741_v43 = vadd.f32 %v2740_v36, %v2686_v0 }
 0x1e1   : > { %v2790_v4 = vmul.f32 %v2684_v41, %v2684_v41  ;;  %v2792_v22 = vmul.f32 %v2686_v0, %v2686_v0  ;;  %v2685_v47 = vmul.f32 %v2591_v49, %v2493_v44  ;;  %v2687_v50 = vmul.f32 %v2596_v12, %v2495_v3  ;;  %2462 = vst [vmem:[%s4864_s20 + $0x50] sm:$0xff] %v3272_v18 }
 0x1e2   : > { %v2496_v58 = vunpack.c.l.bf16 %v2318_v38  ;;  %v2498_v21 = vunpack.c.h.bf16 %v2318_v38  ;;  %v2319_v62 = vpack.c.bf16 %v3341_v26, %v3339_v2  ;;  %v3273_v9 = vpack.c.bf16 %v3341_v26, %v3340_v13  ;;  %v2096_v48 = vpop.f32.mrb[48].mxu1 }
 0x1e3   : > { %v2825_v56 = vadd.f32 %v2824_v57, %v2790_v4  ;;  %v2847_v40 = vadd.f32 %v2846_v42, %v2792_v22  ;;  %v2249_v17 = vpop.f32.mrb[48].mxu0  ;;  %v2730_v30 = vadd.f32 %v2729_v24, %v2685_v47  ;;  %v2752_v27 = vadd.f32 %v2751_v28, %v2687_v50  ;;  %v2098_v32 = vpop.f32.mrb[49].mxu1  ;;  %v5072_v42 = vld [vmem:[#allocation4_spill] sm:$0xff]  ;;  %v5074_v4 = vld [vmem:[#allocation6_spill] sm:$0xff] }
 0x1e4   : > { %v2791_v1 = vmul.f32 %v2685_v47, %v2685_v47  ;;  %v2793_v36 = vmul.f32 %v2687_v50, %v2687_v50  ;;  %v2251_v39 = vpop.f32.mrb[49].mxu0  ;;  %v2688_v60 = vmul.f32 %v2601_v15, %v2496_v58  ;;  %v2690_v51 = vmul.f32 %v2606_v10, %v2498_v21  ;;  %2463 = vst [vmem:[%s4864_s20 + $0x58] sm:$0xff] %v3273_v9  ;;  %v2100_v46 = vpop.f32.mrb[50].mxu1 }
 0x1e5   : > { %v2497_v12 = vunpack.c.l.bf16 %v2319_v62  ;;  %v2499_v49 = vunpack.c.h.bf16 %v2319_v62  ;;  %v2253_v14 = vpop.f32.mrb[50].mxu0  ;;  %v3343_v5 = vadd.f32 %v5072_v42, %v2096_v48  ;;  %v3346_v2 = vadd.f32 %v5073_v23, %v2098_v32  ;;  %v2102_v13 = vpop.f32.mrb[51].mxu1 }
 0x1e6   : > { %v2836_v55 = vadd.f32 %v2835_v54, %v2791_v1  ;;  %v2858_v57 = vadd.f32 %v2857_v20, %v2793_v36  ;;  %v2255_v24 = vpop.f32.mrb[51].mxu0  ;;  %v2720_v28 = vadd.f32 %v2719_v53, %v2688_v60  ;;  %v2742_v59 = vadd.f32 %v2741_v43, %v2690_v51  ;;  %v5075_v54 = vld [vmem:[#allocation7_spill] sm:$0xff]  ;;  %v2616_v47 = vpop.permute.xlu1 %2615 }
 0x1e7   : > { %v2794_v19 = vmul.f32 %v2688_v60, %v2688_v60  ;;  %v2796_v41 = vmul.f32 %v2690_v51, %v2690_v51  ;;  %v2689_v0 = vmul.f32 %v2601_v15, %v2497_v12  ;;  %v2691_v44 = vmul.f32 %v2606_v10, %v2499_v49  ;;  %v2611_v50 = vpop.permute.xlu0 %2610 }
 0x1e8   : > { %v3344_v3 = vadd.f32 %v3343_v5, %v2249_v17  ;;  %v3347_v18 = vadd.f32 %v3346_v2, %v2251_v39  ;;  %v3349_v22 = vadd.f32 %v5074_v4, %v2100_v46  ;;  %v3352_v20 = vadd.f32 %v5075_v54, %v2102_v13 }
 0x1e9   : > { %v2826_v38 = vadd.f32 %v2825_v56, %v2794_v19  ;;  %v2848_v26 = vadd.f32 %v2847_v40, %v2796_v41  ;;  %v2731_v58 = vadd.f32 %v2730_v30, %v2689_v0  ;;  %v2753_v21 = vadd.f32 %v2752_v27, %v2691_v44  ;;  %v5076_v56 = vld [vmem:[#allocation8_spill] sm:$0xff]  ;;  %v5077_v30 = vld [vmem:[#allocation9_spill] sm:$0xff] }
 0x1ea   : > { %v2795_v62 = vmul.f32 %v2689_v0, %v2689_v0  ;;  %v2797_v53 = vmul.f32 %v2691_v44, %v2691_v44  ;;  %v3274_v43 = vpack.c.bf16 %v3347_v18, %v3344_v3  ;;  %v3350_v9 = vadd.f32 %v3349_v22, %v2253_v14  ;;  %v2106_v15 = vpop.f32.mrb[52].mxu1  ;;  %v5078_v14 = vld [vmem:[#allocation3_spill] sm:$0xff]  ;;  %v5079_v41 = vld [vmem:[#allocation12_spill] sm:$0xff]  ;;  %v2626_v22 = vpop.permute.xlu1 %2625 }
 0x1eb   : > { %v3353_v48 = vadd.f32 %v3352_v20, %v2255_v24  ;;  %v2259_v10 = vpop.f32.mrb[52].mxu0  ;;  %v3355_v40 = vadd.f32 %v5076_v56, %v2106_v15  ;;  %v2108_v36 = vpop.f32.mrb[53].mxu1 }
 0x1ec   : > { %v2837_v17 = vadd.f32 %v2836_v55, %v2795_v62  ;;  %v2859_v1 = vadd.f32 %v2858_v57, %v2797_v53  ;;  %v2261_v32 = vpop.f32.mrb[53].mxu0  ;;  %2464 = vst [vmem:[%s4864_s20 + $0x60] sm:$0xff] %v3274_v43  ;;  %v2320_v39 = vpack.c.bf16 %v3350_v9, %v3344_v3  ;;  %v3358_v27 = vadd.f32 %v5077_v30, %v2108_v36  ;;  %v2110_v12 = vpop.f32.mrb[54].mxu1 }
 0x1ed   : > { %v2321_v60 = vpack.c.bf16 %v3353_v48, %v3347_v18  ;;  %v3275_v51 = vpack.c.bf16 %v3353_v48, %v3350_v9  ;;  %v2263_v49 = vpop.f32.mrb[54].mxu0  ;;  %v3356_v46 = vadd.f32 %v3355_v40, %v2259_v10  ;;  %v3361_v42 = vadd.f32 %v5078_v14, %v2110_v12  ;;  %v2112_v5 = vpop.f32.mrb[55].mxu1 }
 0x1ee   : > { %v2265_v23 = vpop.f32.mrb[55].mxu0  ;;  %v2500_v55 = vunpack.c.l.bf16 %v2320_v39  ;;  %v2502_v57 = vunpack.c.h.bf16 %v2320_v39  ;;  %v3359_v24 = vadd.f32 %v3358_v27, %v2261_v32  ;;  %v3364_v0 = vadd.f32 %v5079_v41, %v2112_v5  ;;  %v2621_v54 = vpop.permute.xlu0 %2620 }
 0x1ef   : > { %2465 = vst [vmem:[%s4864_s20 + $0x68] sm:$0xff] %v3275_v51  ;;  %v2501_v2 = vunpack.c.l.bf16 %v2321_v60  ;;  %v2503_v13 = vunpack.c.h.bf16 %v2321_v60  ;;  %v3362_v19 = vadd.f32 %v3361_v42, %v2263_v49 }
 0x1f0   : > { %v2692_v44 = vmul.f32 %v2611_v50, %v2500_v55  ;;  %v2694_v3 = vmul.f32 %v2616_v47, %v2502_v57  ;;  %v3276_v20 = vpack.c.bf16 %v3359_v24, %v3356_v46  ;;  %v3365_v53 = vadd.f32 %v3364_v0, %v2265_v23 }
 0x1f1   : > { %v2693_v18 = vmul.f32 %v2611_v50, %v2501_v2  ;;  %v2695_v4 = vmul.f32 %v2616_v47, %v2503_v13  ;;  %v2322_v62 = vpack.c.bf16 %v3362_v19, %v3356_v46 }
 0x1f2   : > { %v2721_v43 = vadd.f32 %v2720_v28, %v2692_v44  ;;  %v2743_v9 = vadd.f32 %v2742_v59, %v2694_v3  ;;  %v2798_v48 = vmul.f32 %v2692_v44, %v2692_v44  ;;  %v2800_v15 = vmul.f32 %v2694_v3, %v2694_v3  ;;  %v2116_v10 = vpop.f32.mrb[56].mxu1  ;;  %2466 = vst [vmem:[%s4864_s20 + $0x70] sm:$0xff] %v3276_v20 }
 0x1f3   : > { %v2269_v56 = vpop.f32.mrb[56].mxu0  ;;  %v2732_v40 = vadd.f32 %v2731_v58, %v2693_v18  ;;  %v2754_v36 = vadd.f32 %v2753_v21, %v2695_v4  ;;  %v2799_v32 = vmul.f32 %v2693_v18, %v2693_v18  ;;  %v2801_v39 = vmul.f32 %v2695_v4, %v2695_v4  ;;  %v2118_v60 = vpop.f32.mrb[57].mxu1 }
 0x1f4   : > { %v2271_v50 = vpop.f32.mrb[57].mxu0  ;;  %v2827_v47 = vadd.f32 %v2826_v38, %v2798_v48  ;;  %v2849_v51 = vadd.f32 %v2848_v26, %v2800_v15  ;;  %v2504_v30 = vunpack.c.l.bf16 %v2322_v62  ;;  %v2506_v27 = vunpack.c.h.bf16 %v2322_v62  ;;  %v2120_v12 = vpop.f32.mrb[58].mxu1 }
 0x1f5   : > { %v2273_v49 = vpop.f32.mrb[58].mxu0  ;;  %v2838_v28 = vadd.f32 %v2837_v17, %v2799_v32  ;;  %v2860_v59 = vadd.f32 %v2859_v1, %v2801_v39  ;;  %v2323_v46 = vpack.c.bf16 %v3365_v53, %v3359_v24  ;;  %v3277_v14 = vpack.c.bf16 %v3365_v53, %v3362_v19  ;;  %v2122_v42 = vpop.f32.mrb[59].mxu1 }
 0x1f6   : > { %v2275_v5 = vpop.f32.mrb[59].mxu0  ;;  %v2696_v58 = vmul.f32 %v2621_v54, %v2504_v30  ;;  %v2698_v21 = vmul.f32 %v2626_v22, %v2506_v27  ;;  %v3367_v23 = vadd.f32 %v4889_v33, %v2116_v10  ;;  %v3370_v55 = vadd.f32 %v4893_v35, %v2118_v60 }
 0x1f7   : > { %2467 = vst [vmem:[%s4864_s20 + $0x78] sm:$0xff] %v3277_v14  ;;  %v2505_v38 = vunpack.c.l.bf16 %v2323_v46  ;;  %v2507_v57 = vunpack.c.h.bf16 %v2323_v46  ;;  %v3373_v26 = vadd.f32 %v4897_v6, %v2120_v12  ;;  %v3376_v2 = vadd.f32 %v4902_v29, %v2122_v42  ;;  %v2636_v12 = vpop.permute.xlu1 %2635 }
 0x1f8   : > { %v2722_v13 = vadd.f32 %v2721_v43, %v2696_v58  ;;  %v2744_v17 = vadd.f32 %v2743_v9, %v2698_v21  ;;  %v2802_v1 = vmul.f32 %v2696_v58, %v2696_v58  ;;  %v2804_v24 = vmul.f32 %v2698_v21, %v2698_v21 }
 0x1f9   : > { %v2697_v19 = vmul.f32 %v2621_v54, %v2505_v38  ;;  %v2699_v41 = vmul.f32 %v2626_v22, %v2507_v57  ;;  %v3368_v0 = vadd.f32 %v3367_v23, %v2269_v56  ;;  %v3371_v44 = vadd.f32 %v3370_v55, %v2271_v50 }
 0x1fa   : > { %v2828_v3 = vadd.f32 %v2827_v47, %v2802_v1  ;;  %v2850_v18 = vadd.f32 %v2849_v51, %v2804_v24  ;;  %v3374_v33 = vadd.f32 %v3373_v26, %v2273_v49  ;;  %v3377_v4 = vadd.f32 %v3376_v2, %v2275_v5  ;;  %v2126_v35 = vpop.f32.mrb[60].mxu1  ;;  %v2631_v49 = vpop.permute.xlu0 %2630 }
 0x1fb   : > { %v2279_v20 = vpop.f32.mrb[60].mxu0  ;;  %v2733_v62 = vadd.f32 %v2732_v40, %v2697_v19  ;;  %v2755_v53 = vadd.f32 %v2754_v36, %v2699_v41  ;;  %v2803_v48 = vmul.f32 %v2697_v19, %v2697_v19  ;;  %v2805_v6 = vmul.f32 %v2699_v41, %v2699_v41  ;;  %v2128_v29 = vpop.f32.mrb[61].mxu1 }
 0x1fc   : > { %v2281_v43 = vpop.f32.mrb[61].mxu0  ;;  %v3278_v9 = vpack.c.bf16 %v3371_v44, %v3368_v0  ;;  %v2324_v15 = vpack.c.bf16 %v3374_v33, %v3368_v0  ;;  %v2325_v54 = vpack.c.bf16 %v3377_v4, %v3371_v44  ;;  %v3279_v22 = vpack.c.bf16 %v3377_v4, %v3374_v33  ;;  %v2130_v10 = vpop.f32.mrb[62].mxu1 }
 0x1fd   : > { %v2283_v56 = vpop.f32.mrb[62].mxu0  ;;  %v2839_v32 = vadd.f32 %v2838_v28, %v2803_v48  ;;  %v2861_v39 = vadd.f32 %v2860_v59, %v2805_v6  ;;  %v3379_v60 = vadd.f32 %v4906_v16, %v2126_v35  ;;  %v3382_v50 = vadd.f32 %v4910_v63, %v2128_v29  ;;  %v2132_v40 = vpop.f32.mrb[63].mxu1 }
 0x1fe   : > { %v2285_v36 = vpop.f32.mrb[63].mxu0  ;;  %2468 = vst [vmem:[%s4864_s20 + $0x80] sm:$0xff] %v3278_v9  ;;  %v2508_v47 = vunpack.c.l.bf16 %v2324_v15  ;;  %v2510_v51 = vunpack.c.h.bf16 %v2324_v15  ;;  %2469 = vst [vmem:[%s4864_s20 + $0x88] sm:$0xff] %v3279_v22  ;;  %v2509_v30 = vunpack.c.l.bf16 %v2325_v54  ;;  %v2511_v27 = vunpack.c.h.bf16 %v2325_v54  ;;  %v2646_v22 = vpop.permute.xlu1 %2645 }
 0x1ff   : > { %v3380_v46 = vadd.f32 %v3379_v60, %v2279_v20  ;;  %v3383_v14 = vadd.f32 %v3382_v50, %v2281_v43  ;;  %v3385_v42 = vadd.f32 %v4915_v61, %v2130_v10  ;;  %v3388_v28 = vadd.f32 %v4919_v7, %v2132_v40  ;;  %v2641_v10 = vpop.permute.xlu0 %2640 }
 0x200   : > { %v2700_v59 = vmul.f32 %v2631_v49, %v2508_v47  ;;  %v2702_v16 = vmul.f32 %v2636_v12, %v2510_v51  ;;  %v2701_v63 = vmul.f32 %v2631_v49, %v2509_v30  ;;  %v2703_v5 = vmul.f32 %v2636_v12, %v2511_v27 }
 0x201   : > { %v3280_v58 = vpack.c.bf16 %v3383_v14, %v3380_v46  ;;  %v3386_v21 = vadd.f32 %v3385_v42, %v2283_v56  ;;  %v3389_v23 = vadd.f32 %v3388_v28, %v2285_v36 }
 0x202   : > { %v2723_v55 = vadd.f32 %v2722_v13, %v2700_v59  ;;  %v2745_v38 = vadd.f32 %v2744_v17, %v2702_v16  ;;  %v2806_v57 = vmul.f32 %v2700_v59, %v2700_v59  ;;  %v2808_v26 = vmul.f32 %v2702_v16, %v2702_v16  ;;  %v2136_v2 = vpop.f32.mrb[64].mxu1 }
 0x203   : > { %v2289_v1 = vpop.f32.mrb[64].mxu0  ;;  %v2734_v24 = vadd.f32 %v2733_v62, %v2701_v63  ;;  %v2756_v19 = vadd.f32 %v2755_v53, %v2703_v5  ;;  %v2807_v41 = vmul.f32 %v2701_v63, %v2701_v63  ;;  %v2809_v61 = vmul.f32 %v2703_v5, %v2703_v5  ;;  %2470 = vst [vmem:[%s4864_s20 + $0x90] sm:$0xff] %v3280_v58  ;;  %v2138_v7 = vpop.f32.mrb[65].mxu1 }
 0x204   : > { %v2291_v0 = vpop.f32.mrb[65].mxu0  ;;  %v2829_v44 = vadd.f32 %v2828_v3, %v2806_v57  ;;  %v2851_v33 = vadd.f32 %v2850_v18, %v2808_v26  ;;  %v2326_v4 = vpack.c.bf16 %v3386_v21, %v3380_v46  ;;  %v2327_v35 = vpack.c.bf16 %v3389_v23, %v3383_v14  ;;  %v2140_v20 = vpop.f32.mrb[66].mxu1 }
 0x205   : > { %v2293_v48 = vpop.f32.mrb[66].mxu0  ;;  %v2840_v13 = vadd.f32 %v2839_v32, %v2807_v41  ;;  %v2862_v17 = vadd.f32 %v2861_v39, %v2809_v61  ;;  %v3281_v6 = vpack.c.bf16 %v3389_v23, %v3386_v21  ;;  %v3391_v29 = vadd.f32 %v4924_v45, %v2136_v2  ;;  %v2142_v43 = vpop.f32.mrb[67].mxu1 }
 0x206   : > { %v2295_v62 = vpop.f32.mrb[67].mxu0  ;;  %v2512_v53 = vunpack.c.l.bf16 %v2326_v4  ;;  %v2514_v9 = vunpack.c.h.bf16 %v2326_v4  ;;  %v2513_v15 = vunpack.c.l.bf16 %v2327_v35  ;;  %v2515_v54 = vunpack.c.h.bf16 %v2327_v35  ;;  %v2656_v61 = vpop.permute.xlu1 %2655 }
 0x207   : > { %2471 = vst [vmem:[%s4864_s20 + $0x98] sm:$0xff] %v3281_v6  ;;  %v3392_v3 = vadd.f32 %v3391_v29, %v2289_v1  ;;  %v3394_v18 = vadd.f32 %v4929_v34, %v2138_v7  ;;  %v3397_v56 = vadd.f32 %v4933_v52, %v2140_v20  ;;  %v3400_v32 = vadd.f32 %v4937_v31, %v2142_v43  ;;  %v2651_v7 = vpop.permute.xlu0 %2650 }
 0x208   : > { %v2704_v39 = vmul.f32 %v2641_v10, %v2512_v53  ;;  %v2706_v60 = vmul.f32 %v2646_v22, %v2514_v9  ;;  %v2705_v50 = vmul.f32 %v2641_v10, %v2513_v15  ;;  %v2707_v45 = vmul.f32 %v2646_v22, %v2515_v54 }
 0x209   : > { %v3395_v40 = vadd.f32 %v3394_v18, %v2291_v0  ;;  %v3398_v36 = vadd.f32 %v3397_v56, %v2293_v48  ;;  %v3401_v47 = vadd.f32 %v3400_v32, %v2295_v62 }
 0x20a   : > { %v2724_v51 = vadd.f32 %v2723_v55, %v2704_v39  ;;  %v2746_v30 = vadd.f32 %v2745_v38, %v2706_v60  ;;  %v2810_v27 = vmul.f32 %v2704_v39, %v2704_v39  ;;  %v2812_v12 = vmul.f32 %v2706_v60, %v2706_v60  ;;  %v2146_v49 = vpop.f32.mrb[68].mxu1 }
 0x20b   : > { %v2299_v46 = vpop.f32.mrb[68].mxu0  ;;  %v2735_v14 = vadd.f32 %v2734_v24, %v2705_v50  ;;  %v2757_v42 = vadd.f32 %v2756_v19, %v2707_v45  ;;  %v2811_v34 = vmul.f32 %v2705_v50, %v2705_v50  ;;  %v2813_v52 = vmul.f32 %v2707_v45, %v2707_v45  ;;  %v2148_v28 = vpop.f32.mrb[69].mxu1 }
 0x20c   : > { %v2301_v31 = vpop.f32.mrb[69].mxu0  ;;  %v2830_v59 = vadd.f32 %v2829_v44, %v2810_v27  ;;  %v2852_v16 = vadd.f32 %v2851_v33, %v2812_v12  ;;  %v3282_v63 = vpack.c.bf16 %v3395_v40, %v3392_v3  ;;  %v2328_v5 = vpack.c.bf16 %v3398_v36, %v3392_v3  ;;  %v2150_v58 = vpop.f32.mrb[70].mxu1 }
 0x20d   : > { %v2303_v21 = vpop.f32.mrb[70].mxu0  ;;  %v2841_v23 = vadd.f32 %v2840_v13, %v2811_v34  ;;  %v2863_v55 = vadd.f32 %v2862_v17, %v2813_v52  ;;  %v2329_v38 = vpack.c.bf16 %v3401_v47, %v3395_v40  ;;  %v3283_v57 = vpack.c.bf16 %v3401_v47, %v3398_v36  ;;  %v2152_v26 = vpop.f32.mrb[71].mxu1 }
 0x20e   : > { %v2305_v2 = vpop.f32.mrb[71].mxu0  ;;  %2472 = vst [vmem:[%s4864_s20 + $0xa0] sm:$0xff] %v3282_v63  ;;  %v2516_v1 = vunpack.c.l.bf16 %v2328_v5  ;;  %v2518_v24 = vunpack.c.h.bf16 %v2328_v5  ;;  %v3403_v19 = vadd.f32 %v4942_v11, %v2146_v49  ;;  %v3406_v41 = vadd.f32 %v4946_v8, %v2148_v28  ;;  %v2666_v45 = vpop.permute.xlu1 %2665 }
 0x20f   : > { %2473 = vst [vmem:[%s4864_s20 + $0xa8] sm:$0xff] %v3283_v57  ;;  %v2517_v0 = vunpack.c.l.bf16 %v2329_v38  ;;  %v2519_v44 = vunpack.c.h.bf16 %v2329_v38  ;;  %v3409_v33 = vadd.f32 %v4950_v25, %v2150_v58  ;;  %v3412_v4 = vadd.f32 %v4955_v37, %v2152_v26  ;;  %v2661_v40 = vpop.permute.xlu0 %2660 }
 0x210   : > { %v2708_v35 = vmul.f32 %v2651_v7, %v2516_v1  ;;  %v2710_v20 = vmul.f32 %v2656_v61, %v2518_v24  ;;  %v3404_v48 = vadd.f32 %v3403_v19, %v2299_v46  ;;  %v3407_v13 = vadd.f32 %v3406_v41, %v2301_v31 }
 0x211   : > { %v2709_v17 = vmul.f32 %v2651_v7, %v2517_v0  ;;  %v2711_v6 = vmul.f32 %v2656_v61, %v2519_v44  ;;  %v3410_v29 = vadd.f32 %v3409_v33, %v2303_v21  ;;  %v3413_v43 = vadd.f32 %v3412_v4, %v2305_v2 }
 0x212   : > { %v2725_v11 = vadd.f32 %v2724_v51, %v2708_v35  ;;  %v2747_v8 = vadd.f32 %v2746_v30, %v2710_v20  ;;  %v2814_v62 = vmul.f32 %v2708_v35, %v2708_v35  ;;  %v2816_v53 = vmul.f32 %v2710_v20, %v2710_v20 }
 0x213   : > { %v2736_v9 = vadd.f32 %v2735_v14, %v2709_v17  ;;  %v2758_v15 = vadd.f32 %v2757_v42, %v2711_v6  ;;  %v2815_v54 = vmul.f32 %v2709_v17, %v2709_v17  ;;  %v2817_v25 = vmul.f32 %v2711_v6, %v2711_v6 }
 0x214   : > { %v2831_v22 = vadd.f32 %v2830_v59, %v2814_v62  ;;  %v2853_v37 = vadd.f32 %v2852_v16, %v2816_v53  ;;  %v3284_v10 = vpack.c.bf16 %v3407_v13, %v3404_v48  ;;  %v2330_v3 = vpack.c.bf16 %v3410_v29, %v3404_v48 }
 0x215   : > { %v2842_v18 = vadd.f32 %v2841_v23, %v2815_v54  ;;  %v2864_v56 = vadd.f32 %v2863_v55, %v2817_v25  ;;  %v2331_v32 = vpack.c.bf16 %v3413_v43, %v3407_v13  ;;  %v3285_v39 = vpack.c.bf16 %v3413_v43, %v3410_v29 }
 0x216   : > { %2474 = vst [vmem:[%s4864_s20 + $0xb0] sm:$0xff] %v3284_v10  ;;  %v2520_v60 = vunpack.c.l.bf16 %v2330_v3  ;;  %v2522_v50 = vunpack.c.h.bf16 %v2330_v3 }
 0x217   : > { %2475 = vst [vmem:[%s4864_s20 + $0xb8] sm:$0xff] %v3285_v39  ;;  %v2521_v36 = vunpack.c.l.bf16 %v2331_v32  ;;  %v2523_v47 = vunpack.c.h.bf16 %v2331_v32 }
 0x218   : > { %v2712_v51 = vmul.f32 %v2661_v40, %v2520_v60  ;;  %v2714_v30 = vmul.f32 %v2666_v45, %v2522_v50 }
 0x219   : > { %v2713_v27 = vmul.f32 %v2661_v40, %v2521_v36  ;;  %v2715_v12 = vmul.f32 %v2666_v45, %v2523_v47 }
 0x21a   : > { %v2726_v49 = vadd.f32 %v2725_v11, %v2712_v51  ;;  %v2748_v46 = vadd.f32 %v2747_v8, %v2714_v30  ;;  %v2818_v14 = vmul.f32 %v2712_v51, %v2712_v51  ;;  %v2820_v42 = vmul.f32 %v2714_v30, %v2714_v30 }
 0x21b   : > { %v2737_v34 = vadd.f32 %v2736_v9, %v2713_v27  ;;  %v2759_v52 = vadd.f32 %v2758_v15, %v2715_v12  ;;  %v2819_v28 = vmul.f32 %v2713_v27, %v2713_v27  ;;  %v2821_v31 = vmul.f32 %v2715_v12, %v2715_v12 }
 0x21c   : > { %v2760_v59 = vadd.f32 %v2748_v46, %v2726_v49  ;;  %v2832_v16 = vadd.f32 %v2831_v22, %v2818_v14  ;;  %v2854_v63 = vadd.f32 %v2853_v37, %v2820_v42 }
 0x21d   : > { %v2767_v5 = vadd.f32 %v2759_v52, %v2737_v34  ;;  %v2843_v58 = vadd.f32 %v2842_v18, %v2819_v28  ;;  %v2865_v21 = vadd.f32 %v2864_v56, %v2821_v31 }
 0x21e   : > { %v2761_v23 = vrot.slane %v2760_v59, 4  ;;  %v2866_v55 = vadd.f32 %v2854_v63, %v2832_v16 }
 0x21f   : > { %v2768_v38 = vrot.slane %v2767_v5, 4  ;;  %v2873_v57 = vadd.f32 %v2865_v21, %v2843_v58 }
 0x220   : > { %v2762_v26 = vadd.f32 %v2761_v23, %v2760_v59  ;;  %v2867_v2 = vrot.slane %v2866_v55, 4 }
 0x221   : > { %v2769_v1 = vadd.f32 %v2768_v38, %v2767_v5  ;;  %v2874_v24 = vrot.slane %v2873_v57, 4 }
 0x222   : > { %v2763_v19 = vrot.slane %v2762_v26, 2  ;;  %v2868_v41 = vadd.f32 %v2867_v2, %v2866_v55 }
 0x223   : > { %v2770_v61 = vrot.slane %v2769_v1, 2  ;;  %v2875_v7 = vadd.f32 %v2874_v24, %v2873_v57 }
 0x224   : > { %v2764_v0 = vadd.f32 %v2763_v19, %v2762_v26  ;;  %v2869_v44 = vrot.slane %v2868_v41, 2 }
 0x225   : > { %v2771_v33 = vadd.f32 %v2770_v61, %v2769_v1  ;;  %v2876_v4 = vrot.slane %v2875_v7, 2 }
 0x226   : > { %v2765_v35 = vrot.slane %v2764_v0, 1  ;;  %v2870_v20 = vadd.f32 %v2869_v44, %v2868_v41 }
 0x227   : > { %v2772_v48 = vrot.slane %v2771_v33, 1  ;;  %v2877_v13 = vadd.f32 %v2876_v4, %v2875_v7 }
 0x228   : > { %v2871_v17 = vrot.slane %v2870_v20, 1  ;;  %v2766_v29 = vadd.f32 %v2765_v35, %v2764_v0 }
 0x229   : > { %v2878_v6 = vrot.slane %v2877_v13, 1  ;;  %v2773_v11 = vadd.f32 %v2772_v48, %v2771_v33 }
 0x22a   : > { %v2872_v43 = vadd.f32 %v2871_v17, %v2870_v20 }
 0x22b   : > { %v2879_v8 = vadd.f32 %v2878_v6, %v2877_v13 }
 0x22c   : > { %v2881_v62 = vsel %vm2880_vm2, %v2766_v29, %v2872_v43 }
 0x22d   : > { %v2882_v53 = vsel %vm2880_vm2, %v2773_v11, %v2879_v8 }
 0x22e   : > { %v2885_v9 = vcombine.low %v2881_v62, %v2882_v53 }
 0x230   : > { %3258 = vst.sshfl [vmem:[%s265_s25] sm:$0x33 pattern:$0x76325410] %v2885_v9 }
 0x231 PF: > { %s15_s17 = sadd.s32 1, %s3805_s17   ;;  %s5080_s15 = smov %s3801_s16 }
 0x232   : > { %p12_p5 = scmp.ge.s32.totalorder %s15_s17, 4   ;;  %s5081_s16 = smov %s5083_s18 }
 0x234   :  { %14 = sbr.rel (!%p12_p5) target bundleno = 2 (0x2), region = 78 }

</bundles_post_ra>
